<compile_context>
chip_gen: v7x
topology: tpu7x:2x2x1
jax: 0.10.0
libtpu: 0.0.40
codegen_flags: <defaults>
</compile_context>

<pallas_src>
import functools

import numpy as np
import jax
import jax.numpy as jnp
from jax.experimental import pallas as pl
from jax.experimental.pallas import tpu as pltpu


# k=4, s=2, p=1 geometry, expressed on parity (space-to-depth) planes.
# down conv: tap index k (0..3) -> (input parity, plane shift); rows == cols.
_DOWN_TAP = ((1, -1), (0, 0), (1, 0), (0, 1))
# transposed conv: output parity (0/1) -> ((tap k, plane shift), (tap k, plane shift))
_UP_TAP = (((1, 0), (3, -1)), ((0, 1), (2, 0)))


def _build_shift_masks(Ho, Wo):
    """(9, 1, Ho*Wo) 0/1 vectors: position (m,n) is valid for shift (dm,dn) iff
    (m+dm, n+dn) stays inside [0,Ho) x [0,Wo).  O(H*W) memory only."""
    P = Ho * Wo
    m = np.arange(P) // Wo
    n = np.arange(P) % Wo
    out = np.zeros((9, 1, P), np.float32)
    for dm in (-1, 0, 1):
        for dn in (-1, 0, 1):
            ok = (m + dm >= 0) & (m + dm < Ho) & (n + dn >= 0) & (n + dn < Wo)
            out[(dm + 1) * 3 + (dn + 1), 0] = ok.astype(np.float32)
    return out


def _pack_weights(wd, wt):
    """Stack conv taps into a few large MXU operands (matches kernel ordering)."""
    c_inner, c_in = wd.shape[0], wd.shape[1]
    # down: wd_k[o, (ki*4+kj)*c_in + i] = wd[o, i, ki, kj]
    wd_k = jnp.transpose(wd, (0, 2, 3, 1)).reshape(c_inner, 16 * c_in)
    wd_k = wd_k.astype(jnp.float32)
    # up: one (c_out, 4*c_inner) slab per output parity plane (sub-pixel conv)
    planes = []
    for r in range(2):
        for c in range(2):
            blocks = [jnp.transpose(wt[:, :, ki, kj], (1, 0))
                      for ki, _ in _UP_TAP[r] for kj, _ in _UP_TAP[c]]
            planes.append(jnp.concatenate(blocks, axis=1))
    wt_k = jnp.stack(planes, axis=0).astype(jnp.float32)   # (4, c_out, 4*c_inner)
    return wd_k, wt_k


# ----------------------------------------------------------------------------
# Fused Pallas kernel: one batch element per grid step, everything in VMEM
# ----------------------------------------------------------------------------
def _unet_innermost_kernel(x_ref, mask_ref, wd_ref, bd_ref, wt_ref, bu_ref,
                           o_ref,
                           xpad_ref, hpad_ref, dcol_ref, ucol_ref, upark_ref,
                           *, c_in, c_inner, c_out, Ho, Wo, pad):
    P = Ho * Wo
    HW = 4 * P

    # Zero the halo buffers once per step so shifted reads of the pads are 0
    # (the boundary masks also kill them, but this avoids stale-NaN hazards).
    xpad_ref[...] = jnp.zeros(xpad_ref.shape, xpad_ref.dtype)
    hpad_ref[...] = jnp.zeros(hpad_ref.shape, hpad_ref.dtype)

    # ---- LeakyReLU(0.2)(x) written into the center of the halo buffers ------
    for g in range(4):
        xg = x_ref[0, g]                                   # (c_in, P), raw x slab
        xpad_ref[g, :, pad:pad + P] = jnp.where(xg >= 0.0, xg, 0.2 * xg)

    def _masked(v, dm, dn):
        if dm == 0 and dn == 0:
            return v
        return v * mask_ref[(dm + 1) * 3 + (dn + 1)]       # (1, P) 0/1 mask

    # ---- down conv: build im2col in scratch, then ONE MXU matmul ------------
    for ki in range(4):
        r, dm = _DOWN_TAP[ki]
        for kj in range(4):
            c, dn = _DOWN_TAP[kj]
            g, t = 2 * r + c, ki * 4 + kj
            off = pad + dm * Wo + dn
            dcol_ref[t * c_in:(t + 1) * c_in, :] = _masked(
                xpad_ref[g, :, off:off + P], dm, dn)

    h = jnp.dot(wd_ref[...], dcol_ref[...], preferred_element_type=jnp.float32)
    h = jnp.maximum(h + bd_ref[...], 0.0)                  # bias + ReLU (c_inner, P)
    hpad_ref[:, pad:pad + P] = h

    # ---- transposed conv: 4 matmuls, one per output parity plane ------------
    tot = jnp.zeros((c_out, 1), jnp.float32)
    tot2 = jnp.zeros((c_out, 1), jnp.float32)
    for r in range(2):
        for c in range(2):
            g = 2 * r + c
            j = 0
            for _, dm in _UP_TAP[r]:
                for _, dn in _UP_TAP[c]:
                    off = pad + dm * Wo + dn
                    ucol_ref[j * c_inner:(j + 1) * c_inner, :] = _masked(
                        hpad_ref[:, off:off + P], dm, dn)
                    j += 1
            u = jnp.dot(wt_ref[g], ucol_ref[...],
                        preferred_element_type=jnp.float32)       # (c_out, P)
            u = u + bu_ref[...]
            tot = tot + jnp.sum(u, axis=1, keepdims=True)
            tot2 = tot2 + jnp.sum(u * u, axis=1, keepdims=True)
            upark_ref[g] = u                                # park plane in VMEM

    # ---- InstanceNorm2d(affine=False): one-pass stats over all H*W ----------
    mean = tot * (1.0 / HW)
    var = tot2 * (1.0 / HW) - mean * mean
    inv = jax.lax.rsqrt(var + 1e-5)

    # ---- fused skip concat: lane-dense (c_in+c_out, 4*P) output block -------
    # (x part lands at sublane 0; u part at sublane c_in -- aligned whenever
    #  c_in is a multiple of 8, which holds for real UNet channel counts.)
    for g in range(4):
        o_ref[0, 0:c_in, g * P:(g + 1) * P] = x_ref[0, g].astype(o_ref.dtype)
        o_ref[0, c_in:c_in + c_out, g * P:(g + 1) * P] = (
            (upark_ref[g] - mean) * inv).astype(o_ref.dtype)


# ----------------------------------------------------------------------------
# Wrapper: free layout transforms + tiny one-time weight repacking
# ----------------------------------------------------------------------------
def unet_innermost_forward(x, params):
    """x: (B, input_nc, H, W) NCHW -> (B, input_nc + outer_nc, H, W)."""
    B, c_in, H, W = x.shape
    assert H % 2 == 0 and W % 2 == 0, "k=4,s=2,p=1 UNet level needs even H, W"
    Ho, Wo = H // 2, W // 2
    P = Ho * Wo
    wd, bd, wt, bu = params["wd"], params["bd"], params["wt"], params["bu"]
    c_inner, c_out = wd.shape[0], wt.shape[1]
    CT = c_in + c_out
    PAD = 128                              # lane-aligned halo for shifted reads
    PADW = P + 2 * PAD

    # space-to-depth (parity-plane) layout: x_k[b, 2r+c, i, m*Wo+n] = x[b,i,2m+r,2n+c]
    x_k = (x.reshape(B, c_in, Ho, 2, Wo, 2)
             .transpose(0, 3, 5, 1, 2, 4)
             .reshape(B, 4, c_in, P))

    wd_k, wt_k = _pack_weights(wd, wt)
    bd_k = bd.reshape(c_inner, 1).astype(jnp.float32)
    bu_k = bu.reshape(c_out, 1).astype(jnp.float32)
    masks = jnp.asarray(_build_shift_masks(Ho, Wo))         # (9, 1, P)

    kernel = functools.partial(
        _unet_innermost_kernel,
        c_in=c_in, c_inner=c_inner, c_out=c_out, Ho=Ho, Wo=Wo, pad=PAD)

    out_k = pl.pallas_call(
        kernel,
        out_shape=jax.ShapeDtypeStruct((B, CT, 4 * P), x.dtype),
        grid=(B,),
        in_specs=[
            pl.BlockSpec((1, 4, c_in, P), lambda b: (b, 0, 0, 0)),
            pl.BlockSpec((9, 1, P), lambda b: (0, 0, 0)),
            pl.BlockSpec((c_inner, 16 * c_in), lambda b: (0, 0)),
            pl.BlockSpec((c_inner, 1), lambda b: (0, 0)),
            pl.BlockSpec((4, c_out, 4 * c_inner), lambda b: (0, 0, 0)),
            pl.BlockSpec((c_out, 1), lambda b: (0, 0)),
        ],
        out_specs=pl.BlockSpec((1, CT, 4 * P), lambda b: (b, 0, 0)),
        scratch_shapes=[
            pltpu.VMEM((4, c_in, PADW), jnp.float32),   # padded LeakyReLU(x) slabs
            pltpu.VMEM((c_inner, PADW), jnp.float32),   # padded hidden activations
            pltpu.VMEM((16 * c_in, P), jnp.float32),    # down-conv im2col
            pltpu.VMEM((4 * c_inner, P), jnp.float32),  # up-conv col (per parity)
            pltpu.VMEM((4, c_out, P), jnp.float32),     # parked u parity planes
        ],
        compiler_params=pltpu.CompilerParams(
            dimension_semantics=("parallel",),
            vmem_limit_bytes=16 * 1024 * 1024),
    )(x_k, masks, wd_k, bd_k, wt_k, bu_k)

    # depth-to-space undo of the parity layout (skip concat already fused)
    out = (out_k.reshape(B, CT, 2, 2, Ho, Wo)
                .transpose(0, 1, 4, 2, 5, 3)
                .reshape(B, CT, H, W))
    return out


# ----------------------------------------------------------------------------
# Parameters (PyTorch shapes) and pure-JAX reference for the numerics check
# ----------------------------------------------------------------------------
def init_params(key, input_nc, inner_nc, outer_nc):
    k1, k2, k3, k4 = jax.random.split(key, 4)
    return {
        # Conv2d(input_nc, inner_nc, 4, 2, 1, bias=True): weight OIHW
        "wd": 0.05 * jax.random.normal(k1, (inner_nc, input_nc, 4, 4), jnp.float32),
        "bd": 0.05 * jax.random.normal(k2, (inner_nc,), jnp.float32),
        # ConvTranspose2d(inner_nc, outer_nc, 4, 2, 1, bias=True): weight (in, out, kh, kw)
        "wt": 0.05 * jax.random.normal(k3, (inner_nc, outer_nc, 4, 4), jnp.float32),
        "bu": 0.05 * jax.random.normal(k4, (outer_nc,), jnp.float32),
    }


def reference_forward(x, p):
    hi = jax.lax.Precision.HIGHEST
    h = jnp.where(x >= 0, x, 0.2 * x)                        # LeakyReLU(0.2)
    h = jax.lax.conv_general_dilated(
        h, p["wd"], window_strides=(2, 2), padding=((1, 1), (1, 1)),
        dimension_numbers=("NCHW", "OIHW", "NCHW"), precision=hi)
    h = jnp.maximum(h + p["bd"].reshape(1, -1, 1, 1), 0.0)   # bias + ReLU
    wt_flip = jnp.flip(p["wt"], axis=(2, 3)).transpose(1, 0, 2, 3)   # (out, in, kh, kw)
    u = jax.lax.conv_general_dilated(
        h, wt_flip, window_strides=(1, 1), padding=((2, 2), (2, 2)),
        lhs_dilation=(2, 2), dimension_numbers=("NCHW", "OIHW", "NCHW"), precision=hi)
    u = u + p["bu"].reshape(1, -1, 1, 1)
    mean = u.mean(axis=(2, 3), keepdims=True)
    var = ((u - mean) ** 2).mean(axis=(2, 3), keepdims=True)
    un = (u - mean) * jax.lax.rsqrt(var + 1e-5)              # InstanceNorm2d(affine=False)
    return jnp.concatenate([x, un], axis=1)


# ----------------------------------------------------------------------------
if __name__ == "__main__":
    key = jax.random.PRNGKey(0)
    k_x, k_p = jax.random.split(key)

    B, outer_nc, inner_nc = 2, 4, 8
    input_nc = outer_nc          # default: input_nc=None -> outer_nc
    H = W = 16
    x = jax.random.normal(k_x, (B, input_nc, H, W), jnp.float32)
    params = init_params(k_p, input_nc, inner_nc, outer_nc)

    out = jax.jit(unet_innermost_forward)(x, params)
    out = jax.block_until_ready(out)

    ref = reference_forward(x, params)
    assert out.shape == (B, input_nc + outer_nc, H, W), out.shape
    max_err = float(np.max(np.abs(np.asarray(out) - np.asarray(ref))))
    assert np.allclose(np.asarray(out), np.asarray(ref), rtol=1e-3, atol=1e-3), max_err

    print("KERNEL_OK")
</pallas_src>

<mosaic_0001>
module attributes {stable_mosaic.version = 11 : i64} {
  func.func @_unet_innermost_kernel(%arg0: i32, %arg1: memref<1x4x4x64xf32, #tpu.memory_space<vmem>>, %arg2: memref<9x1x64xf32, #tpu.memory_space<vmem>>, %arg3: memref<8x64xf32, #tpu.memory_space<vmem>>, %arg4: memref<8x1xf32, #tpu.memory_space<vmem>>, %arg5: memref<4x4x32xf32, #tpu.memory_space<vmem>>, %arg6: memref<4x1xf32, #tpu.memory_space<vmem>>, %arg7: memref<1x8x256xf32, #tpu.memory_space<vmem>>, %arg8: memref<4x4x320xf32, #tpu.memory_space<vmem>>, %arg9: memref<8x320xf32, #tpu.memory_space<vmem>>, %arg10: memref<64x64xf32, #tpu.memory_space<vmem>>, %arg11: memref<32x64xf32, #tpu.memory_space<vmem>>, %arg12: memref<4x4x64xf32, #tpu.memory_space<vmem>>) attributes {dimension_semantics = [#tpu.dimension_semantics<parallel>], iteration_bounds = array<i64: 2>, scalar_prefetch = 0 : i64, scratch_operands = 5 : i64, tpu.core_type = #tpu.core_type<tc>, window_params = [{transform_indices = @transform_0, window_bounds = array<i64: 1, 4, 4, 64>}, {pipeline_mode = #tpu.pipeline_mode<synchronous>, transform_indices = @transform_1, window_bounds = array<i64: 9, 1, 64>}, {pipeline_mode = #tpu.pipeline_mode<synchronous>, transform_indices = @transform_2, window_bounds = array<i64: 8, 64>}, {pipeline_mode = #tpu.pipeline_mode<synchronous>, transform_indices = @transform_3, window_bounds = array<i64: 8, 1>}, {pipeline_mode = #tpu.pipeline_mode<synchronous>, transform_indices = @transform_4, window_bounds = array<i64: 4, 4, 32>}, {pipeline_mode = #tpu.pipeline_mode<synchronous>, transform_indices = @transform_5, window_bounds = array<i64: 4, 1>}, {transform_indices = @transform_6, window_bounds = array<i64: 1, 8, 256>}]} {
    %cst = arith.constant 0.000000e+00 : f32
    %0 = vector.broadcast %cst : f32 to vector<4x4x320xf32>
    %c0 = arith.constant 0 : index
    %c0_0 = arith.constant 0 : index
    %c0_1 = arith.constant 0 : index
    %1 = vector.load %arg8[%c0, %c0_0, %c0_1] : memref<4x4x320xf32, #tpu.memory_space<vmem>>, vector<4x4x320xf32>
    tpu.vector_store %arg8[%c0, %c0_0, %c0_1], %0 {strides = array<i32>} : memref<4x4x320xf32, #tpu.memory_space<vmem>>, vector<4x4x320xf32>,
    %cst_2 = arith.constant 0.000000e+00 : f32
    %2 = vector.broadcast %cst_2 : f32 to vector<8x320xf32>
    %c0_3 = arith.constant 0 : index
    %c0_4 = arith.constant 0 : index
    %3 = vector.load %arg9[%c0_3, %c0_4] : memref<8x320xf32, #tpu.memory_space<vmem>>, vector<8x320xf32>
    tpu.vector_store %arg9[%c0_3, %c0_4], %2 {strides = array<i32>} : memref<8x320xf32, #tpu.memory_space<vmem>>, vector<8x320xf32>,
    %c0_5 = arith.constant 0 : index
    %c0_6 = arith.constant 0 : index
    %c0_7 = arith.constant 0 : index
    %c0_8 = arith.constant 0 : index
    %4 = vector.load %arg1[%c0_5, %c0_6, %c0_7, %c0_8] : memref<1x4x4x64xf32, #tpu.memory_space<vmem>>, vector<1x1x4x64xf32>
    %5 = vector.shape_cast %4 : vector<1x1x4x64xf32> to vector<4x64xf32>
    %cst_9 = arith.constant 0.000000e+00 : f32
    %6 = vector.broadcast %cst_9 : f32 to vector<4x64xf32>
    %7 = arith.cmpf oge, %5, %6 : vector<4x64xf32>
    %cst_10 = arith.constant 2.000000e-01 : f32
    %8 = vector.broadcast %cst_10 : f32 to vector<4x64xf32>
    %9 = arith.mulf %8, %5 : vector<4x64xf32>
    %10 = arith.select %7, %5, %9 : vector<4x64xi1>, vector<4x64xf32>
    %c0_11 = arith.constant 0 : index
    %c0_12 = arith.constant 0 : index
    %c128 = arith.constant 128 : index
    %11 = vector.load %arg8[%c0_11, %c0_12, %c128] : memref<4x4x320xf32, #tpu.memory_space<vmem>>, vector<1x4x64xf32>
    %12 = vector.shape_cast %11 : vector<1x4x64xf32> to vector<4x64xf32>
    %13 = vector.shape_cast %10 : vector<4x64xf32> to vector<1x4x64xf32>
    tpu.vector_store %arg8[%c0_11, %c0_12, %c128], %13 {strides = array<i32>} : memref<4x4x320xf32, #tpu.memory_space<vmem>>, vector<1x4x64xf32>,
    %c0_13 = arith.constant 0 : index
    %c1 = arith.constant 1 : index
    %c0_14 = arith.constant 0 : index
    %c0_15 = arith.constant 0 : index
    %14 = vector.load %arg1[%c0_13, %c1, %c0_14, %c0_15] : memref<1x4x4x64xf32, #tpu.memory_space<vmem>>, vector<1x1x4x64xf32>
    %15 = vector.shape_cast %14 : vector<1x1x4x64xf32> to vector<4x64xf32>
    %cst_16 = arith.constant 0.000000e+00 : f32
    %16 = vector.broadcast %cst_16 : f32 to vector<4x64xf32>
    %17 = arith.cmpf oge, %15, %16 : vector<4x64xf32>
    %cst_17 = arith.constant 2.000000e-01 : f32
    %18 = vector.broadcast %cst_17 : f32 to vector<4x64xf32>
    %19 = arith.mulf %18, %15 : vector<4x64xf32>
    %20 = arith.select %17, %15, %19 : vector<4x64xi1>, vector<4x64xf32>
    %c1_18 = arith.constant 1 : index
    %c0_19 = arith.constant 0 : index
    %c128_20 = arith.constant 128 : index
    %21 = vector.load %arg8[%c1_18, %c0_19, %c128_20] : memref<4x4x320xf32, #tpu.memory_space<vmem>>, vector<1x4x64xf32>
    %22 = vector.shape_cast %21 : vector<1x4x64xf32> to vector<4x64xf32>
    %23 = vector.shape_cast %20 : vector<4x64xf32> to vector<1x4x64xf32>
    tpu.vector_store %arg8[%c1_18, %c0_19, %c128_20], %23 {strides = array<i32>} : memref<4x4x320xf32, #tpu.memory_space<vmem>>, vector<1x4x64xf32>,
    %c0_21 = arith.constant 0 : index
    %c2 = arith.constant 2 : index
    %c0_22 = arith.constant 0 : index
    %c0_23 = arith.constant 0 : index
    %24 = vector.load %arg1[%c0_21, %c2, %c0_22, %c0_23] : memref<1x4x4x64xf32, #tpu.memory_space<vmem>>, vector<1x1x4x64xf32>
    %25 = vector.shape_cast %24 : vector<1x1x4x64xf32> to vector<4x64xf32>
    %cst_24 = arith.constant 0.000000e+00 : f32
    %26 = vector.broadcast %cst_24 : f32 to vector<4x64xf32>
    %27 = arith.cmpf oge, %25, %26 : vector<4x64xf32>
    %cst_25 = arith.constant 2.000000e-01 : f32
    %28 = vector.broadcast %cst_25 : f32 to vector<4x64xf32>
    %29 = arith.mulf %28, %25 : vector<4x64xf32>
    %30 = arith.select %27, %25, %29 : vector<4x64xi1>, vector<4x64xf32>
    %c2_26 = arith.constant 2 : index
    %c0_27 = arith.constant 0 : index
    %c128_28 = arith.constant 128 : index
    %31 = vector.load %arg8[%c2_26, %c0_27, %c128_28] : memref<4x4x320xf32, #tpu.memory_space<vmem>>, vector<1x4x64xf32>
    %32 = vector.shape_cast %31 : vector<1x4x64xf32> to vector<4x64xf32>
    %33 = vector.shape_cast %30 : vector<4x64xf32> to vector<1x4x64xf32>
    tpu.vector_store %arg8[%c2_26, %c0_27, %c128_28], %33 {strides = array<i32>} : memref<4x4x320xf32, #tpu.memory_space<vmem>>, vector<1x4x64xf32>,
    %c0_29 = arith.constant 0 : index
    %c3 = arith.constant 3 : index
    %c0_30 = arith.constant 0 : index
    %c0_31 = arith.constant 0 : index
    %34 = vector.load %arg1[%c0_29, %c3, %c0_30, %c0_31] : memref<1x4x4x64xf32, #tpu.memory_space<vmem>>, vector<1x1x4x64xf32>
    %35 = vector.shape_cast %34 : vector<1x1x4x64xf32> to vector<4x64xf32>
    %cst_32 = arith.constant 0.000000e+00 : f32
    %36 = vector.broadcast %cst_32 : f32 to vector<4x64xf32>
    %37 = arith.cmpf oge, %35, %36 : vector<4x64xf32>
    %cst_33 = arith.constant 2.000000e-01 : f32
    %38 = vector.broadcast %cst_33 : f32 to vector<4x64xf32>
    %39 = arith.mulf %38, %35 : vector<4x64xf32>
    %40 = arith.select %37, %35, %39 : vector<4x64xi1>, vector<4x64xf32>
    %c3_34 = arith.constant 3 : index
    %c0_35 = arith.constant 0 : index
    %c128_36 = arith.constant 128 : index
    %41 = vector.load %arg8[%c3_34, %c0_35, %c128_36] : memref<4x4x320xf32, #tpu.memory_space<vmem>>, vector<1x4x64xf32>
    %42 = vector.shape_cast %41 : vector<1x4x64xf32> to vector<4x64xf32>
    %43 = vector.shape_cast %40 : vector<4x64xf32> to vector<1x4x64xf32>
    tpu.vector_store %arg8[%c3_34, %c0_35, %c128_36], %43 {strides = array<i32>} : memref<4x4x320xf32, #tpu.memory_space<vmem>>, vector<1x4x64xf32>,
    %c3_37 = arith.constant 3 : index
    %c0_38 = arith.constant 0 : index
    %c119 = arith.constant 119 : index
    %44 = vector.load %arg8[%c3_37, %c0_38, %c119] : memref<4x4x320xf32, #tpu.memory_space<vmem>>, vector<1x4x64xf32>
    %45 = vector.shape_cast %44 : vector<1x4x64xf32> to vector<4x64xf32>
    %c0_39 = arith.constant 0 : index
    %c0_40 = arith.constant 0 : index
    %c0_41 = arith.constant 0 : index
    %46 = vector.load %arg2[%c0_39, %c0_40, %c0_41] : memref<9x1x64xf32, #tpu.memory_space<vmem>>, vector<1x1x64xf32>
    %47 = vector.shape_cast %46 : vector<1x1x64xf32> to vector<1x64xf32>
    %48 = vector.broadcast %47 : vector<1x64xf32> to vector<4x64xf32>
    %49 = arith.mulf %45, %48 : vector<4x64xf32>
    %c0_42 = arith.constant 0 : index
    %c0_43 = arith.constant 0 : index
    %50 = vector.load %arg10[%c0_42, %c0_43] : memref<64x64xf32, #tpu.memory_space<vmem>>, vector<4x64xf32>
    tpu.vector_store %arg10[%c0_42, %c0_43], %49 {strides = array<i32>} : memref<64x64xf32, #tpu.memory_space<vmem>>, vector<4x64xf32>,
    %c2_44 = arith.constant 2 : index
    %c0_45 = arith.constant 0 : index
    %c120 = arith.constant 120 : index
    %51 = vector.load %arg8[%c2_44, %c0_45, %c120] : memref<4x4x320xf32, #tpu.memory_space<vmem>>, vector<1x4x64xf32>
    %52 = vector.shape_cast %51 : vector<1x4x64xf32> to vector<4x64xf32>
    %c1_46 = arith.constant 1 : index
    %c0_47 = arith.constant 0 : index
    %c0_48 = arith.constant 0 : index
    %53 = vector.load %arg2[%c1_46, %c0_47, %c0_48] : memref<9x1x64xf32, #tpu.memory_space<vmem>>, vector<1x1x64xf32>
    %54 = vector.shape_cast %53 : vector<1x1x64xf32> to vector<1x64xf32>
    %55 = vector.broadcast %54 : vector<1x64xf32> to vector<4x64xf32>
    %56 = arith.mulf %52, %55 : vector<4x64xf32>
    %c4 = arith.constant 4 : index
    %c0_49 = arith.constant 0 : index
    %57 = vector.load %arg10[%c4, %c0_49] : memref<64x64xf32, #tpu.memory_space<vmem>>, vector<4x64xf32>
    tpu.vector_store %arg10[%c4, %c0_49], %56 {strides = array<i32>} : memref<64x64xf32, #tpu.memory_space<vmem>>, vector<4x64xf32>,
    %c3_50 = arith.constant 3 : index
    %c0_51 = arith.constant 0 : index
    %c120_52 = arith.constant 120 : index
    %58 = vector.load %arg8[%c3_50, %c0_51, %c120_52] : memref<4x4x320xf32, #tpu.memory_space<vmem>>, vector<1x4x64xf32>
    %59 = vector.shape_cast %58 : vector<1x4x64xf32> to vector<4x64xf32>
    %c1_53 = arith.constant 1 : index
    %c0_54 = arith.constant 0 : index
    %c0_55 = arith.constant 0 : index
    %60 = vector.load %arg2[%c1_53, %c0_54, %c0_55] : memref<9x1x64xf32, #tpu.memory_space<vmem>>, vector<1x1x64xf32>
    %61 = vector.shape_cast %60 : vector<1x1x64xf32> to vector<1x64xf32>
    %62 = vector.broadcast %61 : vector<1x64xf32> to vector<4x64xf32>
    %63 = arith.mulf %59, %62 : vector<4x64xf32>
    %c8 = arith.constant 8 : index
    %c0_56 = arith.constant 0 : index
    %64 = vector.load %arg10[%c8, %c0_56] : memref<64x64xf32, #tpu.memory_space<vmem>>, vector<4x64xf32>
    tpu.vector_store %arg10[%c8, %c0_56], %63 {strides = array<i32>} : memref<64x64xf32, #tpu.memory_space<vmem>>, vector<4x64xf32>,
    %c2_57 = arith.constant 2 : index
    %c0_58 = arith.constant 0 : index
    %c121 = arith.constant 121 : index
    %65 = vector.load %arg8[%c2_57, %c0_58, %c121] : memref<4x4x320xf32, #tpu.memory_space<vmem>>, vector<1x4x64xf32>
    %66 = vector.shape_cast %65 : vector<1x4x64xf32> to vector<4x64xf32>
    %c2_59 = arith.constant 2 : index
    %c0_60 = arith.constant 0 : index
    %c0_61 = arith.constant 0 : index
    %67 = vector.load %arg2[%c2_59, %c0_60, %c0_61] : memref<9x1x64xf32, #tpu.memory_space<vmem>>, vector<1x1x64xf32>
    %68 = vector.shape_cast %67 : vector<1x1x64xf32> to vector<1x64xf32>
    %69 = vector.broadcast %68 : vector<1x64xf32> to vector<4x64xf32>
    %70 = arith.mulf %66, %69 : vector<4x64xf32>
    %c12 = arith.constant 12 : index
    %c0_62 = arith.constant 0 : index
    %71 = vector.load %arg10[%c12, %c0_62] : memref<64x64xf32, #tpu.memory_space<vmem>>, vector<4x64xf32>
    tpu.vector_store %arg10[%c12, %c0_62], %70 {strides = array<i32>} : memref<64x64xf32, #tpu.memory_space<vmem>>, vector<4x64xf32>,
    %c1_63 = arith.constant 1 : index
    %c0_64 = arith.constant 0 : index
    %c127 = arith.constant 127 : index
    %72 = vector.load %arg8[%c1_63, %c0_64, %c127] : memref<4x4x320xf32, #tpu.memory_space<vmem>>, vector<1x4x64xf32>
    %73 = vector.shape_cast %72 : vector<1x4x64xf32> to vector<4x64xf32>
    %c3_65 = arith.constant 3 : index
    %c0_66 = arith.constant 0 : index
    %c0_67 = arith.constant 0 : index
    %74 = vector.load %arg2[%c3_65, %c0_66, %c0_67] : memref<9x1x64xf32, #tpu.memory_space<vmem>>, vector<1x1x64xf32>
    %75 = vector.shape_cast %74 : vector<1x1x64xf32> to vector<1x64xf32>
    %76 = vector.broadcast %75 : vector<1x64xf32> to vector<4x64xf32>
    %77 = arith.mulf %73, %76 : vector<4x64xf32>
    %c16 = arith.constant 16 : index
    %c0_68 = arith.constant 0 : index
    %78 = vector.load %arg10[%c16, %c0_68] : memref<64x64xf32, #tpu.memory_space<vmem>>, vector<4x64xf32>
    tpu.vector_store %arg10[%c16, %c0_68], %77 {strides = array<i32>} : memref<64x64xf32, #tpu.memory_space<vmem>>, vector<4x64xf32>,
    %c0_69 = arith.constant 0 : index
    %c0_70 = arith.constant 0 : index
    %c128_71 = arith.constant 128 : index
    %79 = vector.load %arg8[%c0_69, %c0_70, %c128_71] : memref<4x4x320xf32, #tpu.memory_space<vmem>>, vector<1x4x64xf32>
    %80 = vector.shape_cast %79 : vector<1x4x64xf32> to vector<4x64xf32>
    %c20 = arith.constant 20 : index
    %c0_72 = arith.constant 0 : index
    %81 = vector.load %arg10[%c20, %c0_72] : memref<64x64xf32, #tpu.memory_space<vmem>>, vector<4x64xf32>
    tpu.vector_store %arg10[%c20, %c0_72], %80 {strides = array<i32>} : memref<64x64xf32, #tpu.memory_space<vmem>>, vector<4x64xf32>,
    %c1_73 = arith.constant 1 : index
    %c0_74 = arith.constant 0 : index
    %c128_75 = arith.constant 128 : index
    %82 = vector.load %arg8[%c1_73, %c0_74, %c128_75] : memref<4x4x320xf32, #tpu.memory_space<vmem>>, vector<1x4x64xf32>
    %83 = vector.shape_cast %82 : vector<1x4x64xf32> to vector<4x64xf32>
    %c24 = arith.constant 24 : index
    %c0_76 = arith.constant 0 : index
    %84 = vector.load %arg10[%c24, %c0_76] : memref<64x64xf32, #tpu.memory_space<vmem>>, vector<4x64xf32>
    tpu.vector_store %arg10[%c24, %c0_76], %83 {strides = array<i32>} : memref<64x64xf32, #tpu.memory_space<vmem>>, vector<4x64xf32>,
    %c0_77 = arith.constant 0 : index
    %c0_78 = arith.constant 0 : index
    %c129 = arith.constant 129 : index
    %85 = vector.load %arg8[%c0_77, %c0_78, %c129] : memref<4x4x320xf32, #tpu.memory_space<vmem>>, vector<1x4x64xf32>
    %86 = vector.shape_cast %85 : vector<1x4x64xf32> to vector<4x64xf32>
    %c5 = arith.constant 5 : index
    %c0_79 = arith.constant 0 : index
    %c0_80 = arith.constant 0 : index
    %87 = vector.load %arg2[%c5, %c0_79, %c0_80] : memref<9x1x64xf32, #tpu.memory_space<vmem>>, vector<1x1x64xf32>
    %88 = vector.shape_cast %87 : vector<1x1x64xf32> to vector<1x64xf32>
    %89 = vector.broadcast %88 : vector<1x64xf32> to vector<4x64xf32>
    %90 = arith.mulf %86, %89 : vector<4x64xf32>
    %c28 = arith.constant 28 : index
    %c0_81 = arith.constant 0 : index
    %91 = vector.load %arg10[%c28, %c0_81] : memref<64x64xf32, #tpu.memory_space<vmem>>, vector<4x64xf32>
    tpu.vector_store %arg10[%c28, %c0_81], %90 {strides = array<i32>} : memref<64x64xf32, #tpu.memory_space<vmem>>, vector<4x64xf32>,
    %c3_82 = arith.constant 3 : index
    %c0_83 = arith.constant 0 : index
    %c127_84 = arith.constant 127 : index
    %92 = vector.load %arg8[%c3_82, %c0_83, %c127_84] : memref<4x4x320xf32, #tpu.memory_space<vmem>>, vector<1x4x64xf32>
    %93 = vector.shape_cast %92 : vector<1x4x64xf32> to vector<4x64xf32>
    %c3_85 = arith.constant 3 : index
    %c0_86 = arith.constant 0 : index
    %c0_87 = arith.constant 0 : index
    %94 = vector.load %arg2[%c3_85, %c0_86, %c0_87] : memref<9x1x64xf32, #tpu.memory_space<vmem>>, vector<1x1x64xf32>
    %95 = vector.shape_cast %94 : vector<1x1x64xf32> to vector<1x64xf32>
    %96 = vector.broadcast %95 : vector<1x64xf32> to vector<4x64xf32>
    %97 = arith.mulf %93, %96 : vector<4x64xf32>
    %c32 = arith.constant 32 : index
    %c0_88 = arith.constant 0 : index
    %98 = vector.load %arg10[%c32, %c0_88] : memref<64x64xf32, #tpu.memory_space<vmem>>, vector<4x64xf32>
    tpu.vector_store %arg10[%c32, %c0_88], %97 {strides = array<i32>} : memref<64x64xf32, #tpu.memory_space<vmem>>, vector<4x64xf32>,
    %c2_89 = arith.constant 2 : index
    %c0_90 = arith.constant 0 : index
    %c128_91 = arith.constant 128 : index
    %99 = vector.load %arg8[%c2_89, %c0_90, %c128_91] : memref<4x4x320xf32, #tpu.memory_space<vmem>>, vector<1x4x64xf32>
    %100 = vector.shape_cast %99 : vector<1x4x64xf32> to vector<4x64xf32>
    %c36 = arith.constant 36 : index
    %c0_92 = arith.constant 0 : index
    %101 = vector.load %arg10[%c36, %c0_92] : memref<64x64xf32, #tpu.memory_space<vmem>>, vector<4x64xf32>
    tpu.vector_store %arg10[%c36, %c0_92], %100 {strides = array<i32>} : memref<64x64xf32, #tpu.memory_space<vmem>>, vector<4x64xf32>,
    %c3_93 = arith.constant 3 : index
    %c0_94 = arith.constant 0 : index
    %c128_95 = arith.constant 128 : index
    %102 = vector.load %arg8[%c3_93, %c0_94, %c128_95] : memref<4x4x320xf32, #tpu.memory_space<vmem>>, vector<1x4x64xf32>
    %103 = vector.shape_cast %102 : vector<1x4x64xf32> to vector<4x64xf32>
    %c40 = arith.constant 40 : index
    %c0_96 = arith.constant 0 : index
    %104 = vector.load %arg10[%c40, %c0_96] : memref<64x64xf32, #tpu.memory_space<vmem>>, vector<4x64xf32>
    tpu.vector_store %arg10[%c40, %c0_96], %103 {strides = array<i32>} : memref<64x64xf32, #tpu.memory_space<vmem>>, vector<4x64xf32>,
    %c2_97 = arith.constant 2 : index
    %c0_98 = arith.constant 0 : index
    %c129_99 = arith.constant 129 : index
    %105 = vector.load %arg8[%c2_97, %c0_98, %c129_99] : memref<4x4x320xf32, #tpu.memory_space<vmem>>, vector<1x4x64xf32>
    %106 = vector.shape_cast %105 : vector<1x4x64xf32> to vector<4x64xf32>
    %c5_100 = arith.constant 5 : index
    %c0_101 = arith.constant 0 : index
    %c0_102 = arith.constant 0 : index
    %107 = vector.load %arg2[%c5_100, %c0_101, %c0_102] : memref<9x1x64xf32, #tpu.memory_space<vmem>>, vector<1x1x64xf32>
    %108 = vector.shape_cast %107 : vector<1x1x64xf32> to vector<1x64xf32>
    %109 = vector.broadcast %108 : vector<1x64xf32> to vector<4x64xf32>
    %110 = arith.mulf %106, %109 : vector<4x64xf32>
    %c44 = arith.constant 44 : index
    %c0_103 = arith.constant 0 : index
    %111 = vector.load %arg10[%c44, %c0_103] : memref<64x64xf32, #tpu.memory_space<vmem>>, vector<4x64xf32>
    tpu.vector_store %arg10[%c44, %c0_103], %110 {strides = array<i32>} : memref<64x64xf32, #tpu.memory_space<vmem>>, vector<4x64xf32>,
    %c1_104 = arith.constant 1 : index
    %c0_105 = arith.constant 0 : index
    %c135 = arith.constant 135 : index
    %112 = vector.load %arg8[%c1_104, %c0_105, %c135] : memref<4x4x320xf32, #tpu.memory_space<vmem>>, vector<1x4x64xf32>
    %113 = vector.shape_cast %112 : vector<1x4x64xf32> to vector<4x64xf32>
    %c6 = arith.constant 6 : index
    %c0_106 = arith.constant 0 : index
    %c0_107 = arith.constant 0 : index
    %114 = vector.load %arg2[%c6, %c0_106, %c0_107] : memref<9x1x64xf32, #tpu.memory_space<vmem>>, vector<1x1x64xf32>
    %115 = vector.shape_cast %114 : vector<1x1x64xf32> to vector<1x64xf32>
    %116 = vector.broadcast %115 : vector<1x64xf32> to vector<4x64xf32>
    %117 = arith.mulf %113, %116 : vector<4x64xf32>
    %c48 = arith.constant 48 : index
    %c0_108 = arith.constant 0 : index
    %118 = vector.load %arg10[%c48, %c0_108] : memref<64x64xf32, #tpu.memory_space<vmem>>, vector<4x64xf32>
    tpu.vector_store %arg10[%c48, %c0_108], %117 {strides = array<i32>} : memref<64x64xf32, #tpu.memory_space<vmem>>, vector<4x64xf32>,
    %c0_109 = arith.constant 0 : index
    %c0_110 = arith.constant 0 : index
    %c136 = arith.constant 136 : index
    %119 = vector.load %arg8[%c0_109, %c0_110, %c136] : memref<4x4x320xf32, #tpu.memory_space<vmem>>, vector<1x4x64xf32>
    %120 = vector.shape_cast %119 : vector<1x4x64xf32> to vector<4x64xf32>
    %c7 = arith.constant 7 : index
    %c0_111 = arith.constant 0 : index
    %c0_112 = arith.constant 0 : index
    %121 = vector.load %arg2[%c7, %c0_111, %c0_112] : memref<9x1x64xf32, #tpu.memory_space<vmem>>, vector<1x1x64xf32>
    %122 = vector.shape_cast %121 : vector<1x1x64xf32> to vector<1x64xf32>
    %123 = vector.broadcast %122 : vector<1x64xf32> to vector<4x64xf32>
    %124 = arith.mulf %120, %123 : vector<4x64xf32>
    %c52 = arith.constant 52 : index
    %c0_113 = arith.constant 0 : index
    %125 = vector.load %arg10[%c52, %c0_113] : memref<64x64xf32, #tpu.memory_space<vmem>>, vector<4x64xf32>
    tpu.vector_store %arg10[%c52, %c0_113], %124 {strides = array<i32>} : memref<64x64xf32, #tpu.memory_space<vmem>>, vector<4x64xf32>,
    %c1_114 = arith.constant 1 : index
    %c0_115 = arith.constant 0 : index
    %c136_116 = arith.constant 136 : index
    %126 = vector.load %arg8[%c1_114, %c0_115, %c136_116] : memref<4x4x320xf32, #tpu.memory_space<vmem>>, vector<1x4x64xf32>
    %127 = vector.shape_cast %126 : vector<1x4x64xf32> to vector<4x64xf32>
    %c7_117 = arith.constant 7 : index
    %c0_118 = arith.constant 0 : index
    %c0_119 = arith.constant 0 : index
    %128 = vector.load %arg2[%c7_117, %c0_118, %c0_119] : memref<9x1x64xf32, #tpu.memory_space<vmem>>, vector<1x1x64xf32>
    %129 = vector.shape_cast %128 : vector<1x1x64xf32> to vector<1x64xf32>
    %130 = vector.broadcast %129 : vector<1x64xf32> to vector<4x64xf32>
    %131 = arith.mulf %127, %130 : vector<4x64xf32>
    %c56 = arith.constant 56 : index
    %c0_120 = arith.constant 0 : index
    %132 = vector.load %arg10[%c56, %c0_120] : memref<64x64xf32, #tpu.memory_space<vmem>>, vector<4x64xf32>
    tpu.vector_store %arg10[%c56, %c0_120], %131 {strides = array<i32>} : memref<64x64xf32, #tpu.memory_space<vmem>>, vector<4x64xf32>,
    %c0_121 = arith.constant 0 : index
    %c0_122 = arith.constant 0 : index
    %c137 = arith.constant 137 : index
    %133 = vector.load %arg8[%c0_121, %c0_122, %c137] : memref<4x4x320xf32, #tpu.memory_space<vmem>>, vector<1x4x64xf32>
    %134 = vector.shape_cast %133 : vector<1x4x64xf32> to vector<4x64xf32>
    %c8_123 = arith.constant 8 : index
    %c0_124 = arith.constant 0 : index
    %c0_125 = arith.constant 0 : index
    %135 = vector.load %arg2[%c8_123, %c0_124, %c0_125] : memref<9x1x64xf32, #tpu.memory_space<vmem>>, vector<1x1x64xf32>
    %136 = vector.shape_cast %135 : vector<1x1x64xf32> to vector<1x64xf32>
    %137 = vector.broadcast %136 : vector<1x64xf32> to vector<4x64xf32>
    %138 = arith.mulf %134, %137 : vector<4x64xf32>
    %c60 = arith.constant 60 : index
    %c0_126 = arith.constant 0 : index
    %139 = vector.load %arg10[%c60, %c0_126] : memref<64x64xf32, #tpu.memory_space<vmem>>, vector<4x64xf32>
    tpu.vector_store %arg10[%c60, %c0_126], %138 {strides = array<i32>} : memref<64x64xf32, #tpu.memory_space<vmem>>, vector<4x64xf32>,
    %c0_127 = arith.constant 0 : index
    %c0_128 = arith.constant 0 : index
    %140 = vector.load %arg3[%c0_127, %c0_128] : memref<8x64xf32, #tpu.memory_space<vmem>>, vector<8x64xf32>
    %c0_129 = arith.constant 0 : index
    %c0_130 = arith.constant 0 : index
    %141 = vector.load %arg10[%c0_129, %c0_130] : memref<64x64xf32, #tpu.memory_space<vmem>>, vector<64x64xf32>
    %cst_131 = arith.constant dense<0.000000e+00> : vector<8x64xf32>
    %142 = tpu.matmul %140, %141, %cst_131 {dimension_numbers = #tpu.dot_dimension_numbers<[1], [0], [0], [1], [0, 0, 1, 1], [], []>} : vector<8x64xf32>, vector<64x64xf32>, vector<8x64xf32> -> vector<8x64xf32>
    %c0_132 = arith.constant 0 : index
    %c0_133 = arith.constant 0 : index
    %143 = vector.load %arg4[%c0_132, %c0_133] : memref<8x1xf32, #tpu.memory_space<vmem>>, vector<8x1xf32>
    %144 = vector.broadcast %143 : vector<8x1xf32> to vector<8x64xf32>
    %145 = arith.addf %142, %144 : vector<8x64xf32>
    %cst_134 = arith.constant 0.000000e+00 : f32
    %146 = vector.broadcast %cst_134 : f32 to vector<8x64xf32>
    %147 = arith.maximumf %145, %146 : vector<8x64xf32>
    %c0_135 = arith.constant 0 : index
    %c128_136 = arith.constant 128 : index
    %148 = vector.load %arg9[%c0_135, %c128_136] : memref<8x320xf32, #tpu.memory_space<vmem>>, vector<8x64xf32>
    tpu.vector_store %arg9[%c0_135, %c128_136], %147 {strides = array<i32>} : memref<8x320xf32, #tpu.memory_space<vmem>>, vector<8x64xf32>,
    %cst_137 = arith.constant 0.000000e+00 : f32
    %149 = vector.broadcast %cst_137 : f32 to vector<4x1xf32>
    %cst_138 = arith.constant 0.000000e+00 : f32
    %150 = vector.broadcast %cst_138 : f32 to vector<4x1xf32>
    %c0_139 = arith.constant 0 : index
    %c128_140 = arith.constant 128 : index
    %151 = vector.load %arg9[%c0_139, %c128_140] : memref<8x320xf32, #tpu.memory_space<vmem>>, vector<8x64xf32>
    %c0_141 = arith.constant 0 : index
    %c0_142 = arith.constant 0 : index
    %152 = vector.load %arg11[%c0_141, %c0_142] : memref<32x64xf32, #tpu.memory_space<vmem>>, vector<8x64xf32>
    tpu.vector_store %arg11[%c0_141, %c0_142], %151 {strides = array<i32>} : memref<32x64xf32, #tpu.memory_space<vmem>>, vector<8x64xf32>,
    %c0_143 = arith.constant 0 : index
    %c127_144 = arith.constant 127 : index
    %153 = vector.load %arg9[%c0_143, %c127_144] : memref<8x320xf32, #tpu.memory_space<vmem>>, vector<8x64xf32>
    %c3_145 = arith.constant 3 : index
    %c0_146 = arith.constant 0 : index
    %c0_147 = arith.constant 0 : index
    %154 = vector.load %arg2[%c3_145, %c0_146, %c0_147] : memref<9x1x64xf32, #tpu.memory_space<vmem>>, vector<1x1x64xf32>
    %155 = vector.shape_cast %154 : vector<1x1x64xf32> to vector<1x64xf32>
    %156 = vector.broadcast %155 : vector<1x64xf32> to vector<8x64xf32>
    %157 = arith.mulf %153, %156 : vector<8x64xf32>
    %c8_148 = arith.constant 8 : index
    %c0_149 = arith.constant 0 : index
    %158 = vector.load %arg11[%c8_148, %c0_149] : memref<32x64xf32, #tpu.memory_space<vmem>>, vector<8x64xf32>
    tpu.vector_store %arg11[%c8_148, %c0_149], %157 {strides = array<i32>} : memref<32x64xf32, #tpu.memory_space<vmem>>, vector<8x64xf32>,
    %c0_150 = arith.constant 0 : index
    %c120_151 = arith.constant 120 : index
    %159 = vector.load %arg9[%c0_150, %c120_151] : memref<8x320xf32, #tpu.memory_space<vmem>>, vector<8x64xf32>
    %c1_152 = arith.constant 1 : index
    %c0_153 = arith.constant 0 : index
    %c0_154 = arith.constant 0 : index
    %160 = vector.load %arg2[%c1_152, %c0_153, %c0_154] : memref<9x1x64xf32, #tpu.memory_space<vmem>>, vector<1x1x64xf32>
    %161 = vector.shape_cast %160 : vector<1x1x64xf32> to vector<1x64xf32>
    %162 = vector.broadcast %161 : vector<1x64xf32> to vector<8x64xf32>
    %163 = arith.mulf %159, %162 : vector<8x64xf32>
    %c16_155 = arith.constant 16 : index
    %c0_156 = arith.constant 0 : index
    %164 = vector.load %arg11[%c16_155, %c0_156] : memref<32x64xf32, #tpu.memory_space<vmem>>, vector<8x64xf32>
    tpu.vector_store %arg11[%c16_155, %c0_156], %163 {strides = array<i32>} : memref<32x64xf32, #tpu.memory_space<vmem>>, vector<8x64xf32>,
    %c0_157 = arith.constant 0 : index
    %c119_158 = arith.constant 119 : index
    %165 = vector.load %arg9[%c0_157, %c119_158] : memref<8x320xf32, #tpu.memory_space<vmem>>, vector<8x64xf32>
    %c0_159 = arith.constant 0 : index
    %c0_160 = arith.constant 0 : index
    %c0_161 = arith.constant 0 : index
    %166 = vector.load %arg2[%c0_159, %c0_160, %c0_161] : memref<9x1x64xf32, #tpu.memory_space<vmem>>, vector<1x1x64xf32>
    %167 = vector.shape_cast %166 : vector<1x1x64xf32> to vector<1x64xf32>
    %168 = vector.broadcast %167 : vector<1x64xf32> to vector<8x64xf32>
    %169 = arith.mulf %165, %168 : vector<8x64xf32>
    %c24_162 = arith.constant 24 : index
    %c0_163 = arith.constant 0 : index
    %170 = vector.load %arg11[%c24_162, %c0_163] : memref<32x64xf32, #tpu.memory_space<vmem>>, vector<8x64xf32>
    tpu.vector_store %arg11[%c24_162, %c0_163], %169 {strides = array<i32>} : memref<32x64xf32, #tpu.memory_space<vmem>>, vector<8x64xf32>,
    %c0_164 = arith.constant 0 : index
    %c0_165 = arith.constant 0 : index
    %c0_166 = arith.constant 0 : index
    %171 = vector.load %arg5[%c0_164, %c0_165, %c0_166] : memref<4x4x32xf32, #tpu.memory_space<vmem>>, vector<1x4x32xf32>
    %172 = vector.shape_cast %171 : vector<1x4x32xf32> to vector<4x32xf32>
    %c0_167 = arith.constant 0 : index
    %c0_168 = arith.constant 0 : index
    %173 = vector.load %arg11[%c0_167, %c0_168] : memref<32x64xf32, #tpu.memory_space<vmem>>, vector<32x64xf32>
    %cst_169 = arith.constant dense<0.000000e+00> : vector<4x64xf32>
    %174 = tpu.matmul %172, %173, %cst_169 {dimension_numbers = #tpu.dot_dimension_numbers<[1], [0], [0], [1], [0, 0, 1, 1], [], []>} : vector<4x32xf32>, vector<32x64xf32>, vector<4x64xf32> -> vector<4x64xf32>
    %c0_170 = arith.constant 0 : index
    %c0_171 = arith.constant 0 : index
    %175 = vector.load %arg6[%c0_170, %c0_171] : memref<4x1xf32, #tpu.memory_space<vmem>>, vector<4x1xf32>
    %176 = vector.broadcast %175 : vector<4x1xf32> to vector<4x64xf32>
    %177 = arith.addf %174, %176 : vector<4x64xf32>
    %cst_172 = arith.constant dense<0.000000e+00> : vector<4xf32>
    %178 = vector.multi_reduction <add>, %177, %cst_172 [1] : vector<4x64xf32> to vector<4xf32>
    %179 = vector.shape_cast %178 : vector<4xf32> to vector<4x1xf32>
    %180 = arith.addf %149, %179 : vector<4x1xf32>
    %181 = arith.mulf %177, %177 : vector<4x64xf32>
    %cst_173 = arith.constant dense<0.000000e+00> : vector<4xf32>
    %182 = vector.multi_reduction <add>, %181, %cst_173 [1] : vector<4x64xf32> to vector<4xf32>
    %183 = vector.shape_cast %182 : vector<4xf32> to vector<4x1xf32>
    %184 = arith.addf %150, %183 : vector<4x1xf32>
    %c0_174 = arith.constant 0 : index
    %c0_175 = arith.constant 0 : index
    %c0_176 = arith.constant 0 : index
    %185 = vector.load %arg12[%c0_174, %c0_175, %c0_176] : memref<4x4x64xf32, #tpu.memory_space<vmem>>, vector<1x4x64xf32>
    %186 = vector.shape_cast %185 : vector<1x4x64xf32> to vector<4x64xf32>
    %187 = vector.shape_cast %177 : vector<4x64xf32> to vector<1x4x64xf32>
    tpu.vector_store %arg12[%c0_174, %c0_175, %c0_176], %187 {strides = array<i32>} : memref<4x4x64xf32, #tpu.memory_space<vmem>>, vector<1x4x64xf32>,
    %c0_177 = arith.constant 0 : index
    %c129_178 = arith.constant 129 : index
    %188 = vector.load %arg9[%c0_177, %c129_178] : memref<8x320xf32, #tpu.memory_space<vmem>>, vector<8x64xf32>
    %c5_179 = arith.constant 5 : index
    %c0_180 = arith.constant 0 : index
    %c0_181 = arith.constant 0 : index
    %189 = vector.load %arg2[%c5_179, %c0_180, %c0_181] : memref<9x1x64xf32, #tpu.memory_space<vmem>>, vector<1x1x64xf32>
    %190 = vector.shape_cast %189 : vector<1x1x64xf32> to vector<1x64xf32>
    %191 = vector.broadcast %190 : vector<1x64xf32> to vector<8x64xf32>
    %192 = arith.mulf %188, %191 : vector<8x64xf32>
    %c0_182 = arith.constant 0 : index
    %c0_183 = arith.constant 0 : index
    %193 = vector.load %arg11[%c0_182, %c0_183] : memref<32x64xf32, #tpu.memory_space<vmem>>, vector<8x64xf32>
    tpu.vector_store %arg11[%c0_182, %c0_183], %192 {strides = array<i32>} : memref<32x64xf32, #tpu.memory_space<vmem>>, vector<8x64xf32>,
    %c0_184 = arith.constant 0 : index
    %c128_185 = arith.constant 128 : index
    %194 = vector.load %arg9[%c0_184, %c128_185] : memref<8x320xf32, #tpu.memory_space<vmem>>, vector<8x64xf32>
    %c8_186 = arith.constant 8 : index
    %c0_187 = arith.constant 0 : index
    %195 = vector.load %arg11[%c8_186, %c0_187] : memref<32x64xf32, #tpu.memory_space<vmem>>, vector<8x64xf32>
    tpu.vector_store %arg11[%c8_186, %c0_187], %194 {strides = array<i32>} : memref<32x64xf32, #tpu.memory_space<vmem>>, vector<8x64xf32>,
    %c0_188 = arith.constant 0 : index
    %c121_189 = arith.constant 121 : index
    %196 = vector.load %arg9[%c0_188, %c121_189] : memref<8x320xf32, #tpu.memory_space<vmem>>, vector<8x64xf32>
    %c2_190 = arith.constant 2 : index
    %c0_191 = arith.constant 0 : index
    %c0_192 = arith.constant 0 : index
    %197 = vector.load %arg2[%c2_190, %c0_191, %c0_192] : memref<9x1x64xf32, #tpu.memory_space<vmem>>, vector<1x1x64xf32>
    %198 = vector.shape_cast %197 : vector<1x1x64xf32> to vector<1x64xf32>
    %199 = vector.broadcast %198 : vector<1x64xf32> to vector<8x64xf32>
    %200 = arith.mulf %196, %199 : vector<8x64xf32>
    %c16_193 = arith.constant 16 : index
    %c0_194 = arith.constant 0 : index
    %201 = vector.load %arg11[%c16_193, %c0_194] : memref<32x64xf32, #tpu.memory_space<vmem>>, vector<8x64xf32>
    tpu.vector_store %arg11[%c16_193, %c0_194], %200 {strides = array<i32>} : memref<32x64xf32, #tpu.memory_space<vmem>>, vector<8x64xf32>,
    %c0_195 = arith.constant 0 : index
    %c120_196 = arith.constant 120 : index
    %202 = vector.load %arg9[%c0_195, %c120_196] : memref<8x320xf32, #tpu.memory_space<vmem>>, vector<8x64xf32>
    %c1_197 = arith.constant 1 : index
    %c0_198 = arith.constant 0 : index
    %c0_199 = arith.constant 0 : index
    %203 = vector.load %arg2[%c1_197, %c0_198, %c0_199] : memref<9x1x64xf32, #tpu.memory_space<vmem>>, vector<1x1x64xf32>
    %204 = vector.shape_cast %203 : vector<1x1x64xf32> to vector<1x64xf32>
    %205 = vector.broadcast %204 : vector<1x64xf32> to vector<8x64xf32>
    %206 = arith.mulf %202, %205 : vector<8x64xf32>
    %c24_200 = arith.constant 24 : index
    %c0_201 = arith.constant 0 : index
    %207 = vector.load %arg11[%c24_200, %c0_201] : memref<32x64xf32, #tpu.memory_space<vmem>>, vector<8x64xf32>
    tpu.vector_store %arg11[%c24_200, %c0_201], %206 {strides = array<i32>} : memref<32x64xf32, #tpu.memory_space<vmem>>, vector<8x64xf32>,
    %c1_202 = arith.constant 1 : index
    %c0_203 = arith.constant 0 : index
    %c0_204 = arith.constant 0 : index
    %208 = vector.load %arg5[%c1_202, %c0_203, %c0_204] : memref<4x4x32xf32, #tpu.memory_space<vmem>>, vector<1x4x32xf32>
    %209 = vector.shape_cast %208 : vector<1x4x32xf32> to vector<4x32xf32>
    %c0_205 = arith.constant 0 : index
    %c0_206 = arith.constant 0 : index
    %210 = vector.load %arg11[%c0_205, %c0_206] : memref<32x64xf32, #tpu.memory_space<vmem>>, vector<32x64xf32>
    %cst_207 = arith.constant dense<0.000000e+00> : vector<4x64xf32>
    %211 = tpu.matmul %209, %210, %cst_207 {dimension_numbers = #tpu.dot_dimension_numbers<[1], [0], [0], [1], [0, 0, 1, 1], [], []>} : vector<4x32xf32>, vector<32x64xf32>, vector<4x64xf32> -> vector<4x64xf32>
    %c0_208 = arith.constant 0 : index
    %c0_209 = arith.constant 0 : index
    %212 = vector.load %arg6[%c0_208, %c0_209] : memref<4x1xf32, #tpu.memory_space<vmem>>, vector<4x1xf32>
    %213 = vector.broadcast %212 : vector<4x1xf32> to vector<4x64xf32>
    %214 = arith.addf %211, %213 : vector<4x64xf32>
    %cst_210 = arith.constant dense<0.000000e+00> : vector<4xf32>
    %215 = vector.multi_reduction <add>, %214, %cst_210 [1] : vector<4x64xf32> to vector<4xf32>
    %216 = vector.shape_cast %215 : vector<4xf32> to vector<4x1xf32>
    %217 = arith.addf %180, %216 : vector<4x1xf32>
    %218 = arith.mulf %214, %214 : vector<4x64xf32>
    %cst_211 = arith.constant dense<0.000000e+00> : vector<4xf32>
    %219 = vector.multi_reduction <add>, %218, %cst_211 [1] : vector<4x64xf32> to vector<4xf32>
    %220 = vector.shape_cast %219 : vector<4xf32> to vector<4x1xf32>
    %221 = arith.addf %184, %220 : vector<4x1xf32>
    %c1_212 = arith.constant 1 : index
    %c0_213 = arith.constant 0 : index
    %c0_214 = arith.constant 0 : index
    %222 = vector.load %arg12[%c1_212, %c0_213, %c0_214] : memref<4x4x64xf32, #tpu.memory_space<vmem>>, vector<1x4x64xf32>
    %223 = vector.shape_cast %222 : vector<1x4x64xf32> to vector<4x64xf32>
    %224 = vector.shape_cast %214 : vector<4x64xf32> to vector<1x4x64xf32>
    tpu.vector_store %arg12[%c1_212, %c0_213, %c0_214], %224 {strides = array<i32>} : memref<4x4x64xf32, #tpu.memory_space<vmem>>, vector<1x4x64xf32>,
    %c0_215 = arith.constant 0 : index
    %c136_216 = arith.constant 136 : index
    %225 = vector.load %arg9[%c0_215, %c136_216] : memref<8x320xf32, #tpu.memory_space<vmem>>, vector<8x64xf32>
    %c7_217 = arith.constant 7 : index
    %c0_218 = arith.constant 0 : index
    %c0_219 = arith.constant 0 : index
    %226 = vector.load %arg2[%c7_217, %c0_218, %c0_219] : memref<9x1x64xf32, #tpu.memory_space<vmem>>, vector<1x1x64xf32>
    %227 = vector.shape_cast %226 : vector<1x1x64xf32> to vector<1x64xf32>
    %228 = vector.broadcast %227 : vector<1x64xf32> to vector<8x64xf32>
    %229 = arith.mulf %225, %228 : vector<8x64xf32>
    %c0_220 = arith.constant 0 : index
    %c0_221 = arith.constant 0 : index
    %230 = vector.load %arg11[%c0_220, %c0_221] : memref<32x64xf32, #tpu.memory_space<vmem>>, vector<8x64xf32>
    tpu.vector_store %arg11[%c0_220, %c0_221], %229 {strides = array<i32>} : memref<32x64xf32, #tpu.memory_space<vmem>>, vector<8x64xf32>,
    %c0_222 = arith.constant 0 : index
    %c135_223 = arith.constant 135 : index
    %231 = vector.load %arg9[%c0_222, %c135_223] : memref<8x320xf32, #tpu.memory_space<vmem>>, vector<8x64xf32>
    %c6_224 = arith.constant 6 : index
    %c0_225 = arith.constant 0 : index
    %c0_226 = arith.constant 0 : index
    %232 = vector.load %arg2[%c6_224, %c0_225, %c0_226] : memref<9x1x64xf32, #tpu.memory_space<vmem>>, vector<1x1x64xf32>
    %233 = vector.shape_cast %232 : vector<1x1x64xf32> to vector<1x64xf32>
    %234 = vector.broadcast %233 : vector<1x64xf32> to vector<8x64xf32>
    %235 = arith.mulf %231, %234 : vector<8x64xf32>
    %c8_227 = arith.constant 8 : index
    %c0_228 = arith.constant 0 : index
    %236 = vector.load %arg11[%c8_227, %c0_228] : memref<32x64xf32, #tpu.memory_space<vmem>>, vector<8x64xf32>
    tpu.vector_store %arg11[%c8_227, %c0_228], %235 {strides = array<i32>} : memref<32x64xf32, #tpu.memory_space<vmem>>, vector<8x64xf32>,
    %c0_229 = arith.constant 0 : index
    %c128_230 = arith.constant 128 : index
    %237 = vector.load %arg9[%c0_229, %c128_230] : memref<8x320xf32, #tpu.memory_space<vmem>>, vector<8x64xf32>
    %c16_231 = arith.constant 16 : index
    %c0_232 = arith.constant 0 : index
    %238 = vector.load %arg11[%c16_231, %c0_232] : memref<32x64xf32, #tpu.memory_space<vmem>>, vector<8x64xf32>
    tpu.vector_store %arg11[%c16_231, %c0_232], %237 {strides = array<i32>} : memref<32x64xf32, #tpu.memory_space<vmem>>, vector<8x64xf32>,
    %c0_233 = arith.constant 0 : index
    %c127_234 = arith.constant 127 : index
    %239 = vector.load %arg9[%c0_233, %c127_234] : memref<8x320xf32, #tpu.memory_space<vmem>>, vector<8x64xf32>
    %c3_235 = arith.constant 3 : index
    %c0_236 = arith.constant 0 : index
    %c0_237 = arith.constant 0 : index
    %240 = vector.load %arg2[%c3_235, %c0_236, %c0_237] : memref<9x1x64xf32, #tpu.memory_space<vmem>>, vector<1x1x64xf32>
    %241 = vector.shape_cast %240 : vector<1x1x64xf32> to vector<1x64xf32>
    %242 = vector.broadcast %241 : vector<1x64xf32> to vector<8x64xf32>
    %243 = arith.mulf %239, %242 : vector<8x64xf32>
    %c24_238 = arith.constant 24 : index
    %c0_239 = arith.constant 0 : index
    %244 = vector.load %arg11[%c24_238, %c0_239] : memref<32x64xf32, #tpu.memory_space<vmem>>, vector<8x64xf32>
    tpu.vector_store %arg11[%c24_238, %c0_239], %243 {strides = array<i32>} : memref<32x64xf32, #tpu.memory_space<vmem>>, vector<8x64xf32>,
    %c2_240 = arith.constant 2 : index
    %c0_241 = arith.constant 0 : index
    %c0_242 = arith.constant 0 : index
    %245 = vector.load %arg5[%c2_240, %c0_241, %c0_242] : memref<4x4x32xf32, #tpu.memory_space<vmem>>, vector<1x4x32xf32>
    %246 = vector.shape_cast %245 : vector<1x4x32xf32> to vector<4x32xf32>
    %c0_243 = arith.constant 0 : index
    %c0_244 = arith.constant 0 : index
    %247 = vector.load %arg11[%c0_243, %c0_244] : memref<32x64xf32, #tpu.memory_space<vmem>>, vector<32x64xf32>
    %cst_245 = arith.constant dense<0.000000e+00> : vector<4x64xf32>
    %248 = tpu.matmul %246, %247, %cst_245 {dimension_numbers = #tpu.dot_dimension_numbers<[1], [0], [0], [1], [0, 0, 1, 1], [], []>} : vector<4x32xf32>, vector<32x64xf32>, vector<4x64xf32> -> vector<4x64xf32>
    %c0_246 = arith.constant 0 : index
    %c0_247 = arith.constant 0 : index
    %249 = vector.load %arg6[%c0_246, %c0_247] : memref<4x1xf32, #tpu.memory_space<vmem>>, vector<4x1xf32>
    %250 = vector.broadcast %249 : vector<4x1xf32> to vector<4x64xf32>
    %251 = arith.addf %248, %250 : vector<4x64xf32>
    %cst_248 = arith.constant dense<0.000000e+00> : vector<4xf32>
    %252 = vector.multi_reduction <add>, %251, %cst_248 [1] : vector<4x64xf32> to vector<4xf32>
    %253 = vector.shape_cast %252 : vector<4xf32> to vector<4x1xf32>
    %254 = arith.addf %217, %253 : vector<4x1xf32>
    %255 = arith.mulf %251, %251 : vector<4x64xf32>
    %cst_249 = arith.constant dense<0.000000e+00> : vector<4xf32>
    %256 = vector.multi_reduction <add>, %255, %cst_249 [1] : vector<4x64xf32> to vector<4xf32>
    %257 = vector.shape_cast %256 : vector<4xf32> to vector<4x1xf32>
    %258 = arith.addf %221, %257 : vector<4x1xf32>
    %c2_250 = arith.constant 2 : index
    %c0_251 = arith.constant 0 : index
    %c0_252 = arith.constant 0 : index
    %259 = vector.load %arg12[%c2_250, %c0_251, %c0_252] : memref<4x4x64xf32, #tpu.memory_space<vmem>>, vector<1x4x64xf32>
    %260 = vector.shape_cast %259 : vector<1x4x64xf32> to vector<4x64xf32>
    %261 = vector.shape_cast %251 : vector<4x64xf32> to vector<1x4x64xf32>
    tpu.vector_store %arg12[%c2_250, %c0_251, %c0_252], %261 {strides = array<i32>} : memref<4x4x64xf32, #tpu.memory_space<vmem>>, vector<1x4x64xf32>,
    %c0_253 = arith.constant 0 : index
    %c137_254 = arith.constant 137 : index
    %262 = vector.load %arg9[%c0_253, %c137_254] : memref<8x320xf32, #tpu.memory_space<vmem>>, vector<8x64xf32>
    %c8_255 = arith.constant 8 : index
    %c0_256 = arith.constant 0 : index
    %c0_257 = arith.constant 0 : index
    %263 = vector.load %arg2[%c8_255, %c0_256, %c0_257] : memref<9x1x64xf32, #tpu.memory_space<vmem>>, vector<1x1x64xf32>
    %264 = vector.shape_cast %263 : vector<1x1x64xf32> to vector<1x64xf32>
    %265 = vector.broadcast %264 : vector<1x64xf32> to vector<8x64xf32>
    %266 = arith.mulf %262, %265 : vector<8x64xf32>
    %c0_258 = arith.constant 0 : index
    %c0_259 = arith.constant 0 : index
    %267 = vector.load %arg11[%c0_258, %c0_259] : memref<32x64xf32, #tpu.memory_space<vmem>>, vector<8x64xf32>
    tpu.vector_store %arg11[%c0_258, %c0_259], %266 {strides = array<i32>} : memref<32x64xf32, #tpu.memory_space<vmem>>, vector<8x64xf32>,
    %c0_260 = arith.constant 0 : index
    %c136_261 = arith.constant 136 : index
    %268 = vector.load %arg9[%c0_260, %c136_261] : memref<8x320xf32, #tpu.memory_space<vmem>>, vector<8x64xf32>
    %c7_262 = arith.constant 7 : index
    %c0_263 = arith.constant 0 : index
    %c0_264 = arith.constant 0 : index
    %269 = vector.load %arg2[%c7_262, %c0_263, %c0_264] : memref<9x1x64xf32, #tpu.memory_space<vmem>>, vector<1x1x64xf32>
    %270 = vector.shape_cast %269 : vector<1x1x64xf32> to vector<1x64xf32>
    %271 = vector.broadcast %270 : vector<1x64xf32> to vector<8x64xf32>
    %272 = arith.mulf %268, %271 : vector<8x64xf32>
    %c8_265 = arith.constant 8 : index
    %c0_266 = arith.constant 0 : index
    %273 = vector.load %arg11[%c8_265, %c0_266] : memref<32x64xf32, #tpu.memory_space<vmem>>, vector<8x64xf32>
    tpu.vector_store %arg11[%c8_265, %c0_266], %272 {strides = array<i32>} : memref<32x64xf32, #tpu.memory_space<vmem>>, vector<8x64xf32>,
    %c0_267 = arith.constant 0 : index
    %c129_268 = arith.constant 129 : index
    %274 = vector.load %arg9[%c0_267, %c129_268] : memref<8x320xf32, #tpu.memory_space<vmem>>, vector<8x64xf32>
    %c5_269 = arith.constant 5 : index
    %c0_270 = arith.constant 0 : index
    %c0_271 = arith.constant 0 : index
    %275 = vector.load %arg2[%c5_269, %c0_270, %c0_271] : memref<9x1x64xf32, #tpu.memory_space<vmem>>, vector<1x1x64xf32>
    %276 = vector.shape_cast %275 : vector<1x1x64xf32> to vector<1x64xf32>
    %277 = vector.broadcast %276 : vector<1x64xf32> to vector<8x64xf32>
    %278 = arith.mulf %274, %277 : vector<8x64xf32>
    %c16_272 = arith.constant 16 : index
    %c0_273 = arith.constant 0 : index
    %279 = vector.load %arg11[%c16_272, %c0_273] : memref<32x64xf32, #tpu.memory_space<vmem>>, vector<8x64xf32>
    tpu.vector_store %arg11[%c16_272, %c0_273], %278 {strides = array<i32>} : memref<32x64xf32, #tpu.memory_space<vmem>>, vector<8x64xf32>,
    %c0_274 = arith.constant 0 : index
    %c128_275 = arith.constant 128 : index
    %280 = vector.load %arg9[%c0_274, %c128_275] : memref<8x320xf32, #tpu.memory_space<vmem>>, vector<8x64xf32>
    %c24_276 = arith.constant 24 : index
    %c0_277 = arith.constant 0 : index
    %281 = vector.load %arg11[%c24_276, %c0_277] : memref<32x64xf32, #tpu.memory_space<vmem>>, vector<8x64xf32>
    tpu.vector_store %arg11[%c24_276, %c0_277], %280 {strides = array<i32>} : memref<32x64xf32, #tpu.memory_space<vmem>>, vector<8x64xf32>,
    %c3_278 = arith.constant 3 : index
    %c0_279 = arith.constant 0 : index
    %c0_280 = arith.constant 0 : index
    %282 = vector.load %arg5[%c3_278, %c0_279, %c0_280] : memref<4x4x32xf32, #tpu.memory_space<vmem>>, vector<1x4x32xf32>
    %283 = vector.shape_cast %282 : vector<1x4x32xf32> to vector<4x32xf32>
    %c0_281 = arith.constant 0 : index
    %c0_282 = arith.constant 0 : index
    %284 = vector.load %arg11[%c0_281, %c0_282] : memref<32x64xf32, #tpu.memory_space<vmem>>, vector<32x64xf32>
    %cst_283 = arith.constant dense<0.000000e+00> : vector<4x64xf32>
    %285 = tpu.matmul %283, %284, %cst_283 {dimension_numbers = #tpu.dot_dimension_numbers<[1], [0], [0], [1], [0, 0, 1, 1], [], []>} : vector<4x32xf32>, vector<32x64xf32>, vector<4x64xf32> -> vector<4x64xf32>
    %c0_284 = arith.constant 0 : index
    %c0_285 = arith.constant 0 : index
    %286 = vector.load %arg6[%c0_284, %c0_285] : memref<4x1xf32, #tpu.memory_space<vmem>>, vector<4x1xf32>
    %287 = vector.broadcast %286 : vector<4x1xf32> to vector<4x64xf32>
    %288 = arith.addf %285, %287 : vector<4x64xf32>
    %cst_286 = arith.constant dense<0.000000e+00> : vector<4xf32>
    %289 = vector.multi_reduction <add>, %288, %cst_286 [1] : vector<4x64xf32> to vector<4xf32>
    %290 = vector.shape_cast %289 : vector<4xf32> to vector<4x1xf32>
    %291 = arith.addf %254, %290 : vector<4x1xf32>
    %292 = arith.mulf %288, %288 : vector<4x64xf32>
    %cst_287 = arith.constant dense<0.000000e+00> : vector<4xf32>
    %293 = vector.multi_reduction <add>, %292, %cst_287 [1] : vector<4x64xf32> to vector<4xf32>
    %294 = vector.shape_cast %293 : vector<4xf32> to vector<4x1xf32>
    %295 = arith.addf %258, %294 : vector<4x1xf32>
    %c3_288 = arith.constant 3 : index
    %c0_289 = arith.constant 0 : index
    %c0_290 = arith.constant 0 : index
    %296 = vector.load %arg12[%c3_288, %c0_289, %c0_290] : memref<4x4x64xf32, #tpu.memory_space<vmem>>, vector<1x4x64xf32>
    %297 = vector.shape_cast %296 : vector<1x4x64xf32> to vector<4x64xf32>
    %298 = vector.shape_cast %288 : vector<4x64xf32> to vector<1x4x64xf32>
    tpu.vector_store %arg12[%c3_288, %c0_289, %c0_290], %298 {strides = array<i32>} : memref<4x4x64xf32, #tpu.memory_space<vmem>>, vector<1x4x64xf32>,
    %cst_291 = arith.constant 3.906250e-03 : f32
    %299 = vector.broadcast %cst_291 : f32 to vector<4x1xf32>
    %300 = arith.mulf %291, %299 : vector<4x1xf32>
    %cst_292 = arith.constant 3.906250e-03 : f32
    %301 = vector.broadcast %cst_292 : f32 to vector<4x1xf32>
    %302 = arith.mulf %295, %301 : vector<4x1xf32>
    %303 = arith.mulf %300, %300 : vector<4x1xf32>
    %304 = arith.subf %302, %303 : vector<4x1xf32>
    %cst_293 = arith.constant 9.99999974E-6 : f32
    %305 = vector.broadcast %cst_293 : f32 to vector<4x1xf32>
    %306 = arith.addf %304, %305 : vector<4x1xf32>
    %307 = math.rsqrt %306 : vector<4x1xf32>
    %c0_294 = arith.constant 0 : index
    %c0_295 = arith.constant 0 : index
    %c0_296 = arith.constant 0 : index
    %c0_297 = arith.constant 0 : index
    %308 = vector.load %arg1[%c0_294, %c0_295, %c0_296, %c0_297] : memref<1x4x4x64xf32, #tpu.memory_space<vmem>>, vector<1x1x4x64xf32>
    %309 = vector.shape_cast %308 : vector<1x1x4x64xf32> to vector<4x64xf32>
    %c0_298 = arith.constant 0 : index
    %c0_299 = arith.constant 0 : index
    %c0_300 = arith.constant 0 : index
    %310 = vector.load %arg7[%c0_298, %c0_299, %c0_300] : memref<1x8x256xf32, #tpu.memory_space<vmem>>, vector<1x4x64xf32>
    %311 = vector.shape_cast %310 : vector<1x4x64xf32> to vector<4x64xf32>
    %312 = vector.shape_cast %309 : vector<4x64xf32> to vector<1x4x64xf32>
    tpu.vector_store %arg7[%c0_298, %c0_299, %c0_300], %312 {strides = array<i32>} : memref<1x8x256xf32, #tpu.memory_space<vmem>>, vector<1x4x64xf32>,
    %c0_301 = arith.constant 0 : index
    %c0_302 = arith.constant 0 : index
    %c0_303 = arith.constant 0 : index
    %313 = vector.load %arg12[%c0_301, %c0_302, %c0_303] : memref<4x4x64xf32, #tpu.memory_space<vmem>>, vector<1x4x64xf32>
    %314 = vector.shape_cast %313 : vector<1x4x64xf32> to vector<4x64xf32>
    %315 = vector.broadcast %300 : vector<4x1xf32> to vector<4x64xf32>
    %316 = arith.subf %314, %315 : vector<4x64xf32>
    %317 = vector.broadcast %307 : vector<4x1xf32> to vector<4x64xf32>
    %318 = arith.mulf %316, %317 : vector<4x64xf32>
    %c0_304 = arith.constant 0 : index
    %c4_305 = arith.constant 4 : index
    %c0_306 = arith.constant 0 : index
    %319 = vector.load %arg7[%c0_304, %c4_305, %c0_306] : memref<1x8x256xf32, #tpu.memory_space<vmem>>, vector<1x4x64xf32>
    %320 = vector.shape_cast %319 : vector<1x4x64xf32> to vector<4x64xf32>
    %321 = vector.shape_cast %318 : vector<4x64xf32> to vector<1x4x64xf32>
    tpu.vector_store %arg7[%c0_304, %c4_305, %c0_306], %321 {strides = array<i32>} : memref<1x8x256xf32, #tpu.memory_space<vmem>>, vector<1x4x64xf32>,
    %c0_307 = arith.constant 0 : index
    %c1_308 = arith.constant 1 : index
    %c0_309 = arith.constant 0 : index
    %c0_310 = arith.constant 0 : index
    %322 = vector.load %arg1[%c0_307, %c1_308, %c0_309, %c0_310] : memref<1x4x4x64xf32, #tpu.memory_space<vmem>>, vector<1x1x4x64xf32>
    %323 = vector.shape_cast %322 : vector<1x1x4x64xf32> to vector<4x64xf32>
    %c0_311 = arith.constant 0 : index
    %c0_312 = arith.constant 0 : index
    %c64 = arith.constant 64 : index
    %324 = vector.load %arg7[%c0_311, %c0_312, %c64] : memref<1x8x256xf32, #tpu.memory_space<vmem>>, vector<1x4x64xf32>
    %325 = vector.shape_cast %324 : vector<1x4x64xf32> to vector<4x64xf32>
    %326 = vector.shape_cast %323 : vector<4x64xf32> to vector<1x4x64xf32>
    tpu.vector_store %arg7[%c0_311, %c0_312, %c64], %326 {strides = array<i32>} : memref<1x8x256xf32, #tpu.memory_space<vmem>>, vector<1x4x64xf32>,
    %c1_313 = arith.constant 1 : index
    %c0_314 = arith.constant 0 : index
    %c0_315 = arith.constant 0 : index
    %327 = vector.load %arg12[%c1_313, %c0_314, %c0_315] : memref<4x4x64xf32, #tpu.memory_space<vmem>>, vector<1x4x64xf32>
    %328 = vector.shape_cast %327 : vector<1x4x64xf32> to vector<4x64xf32>
    %329 = vector.broadcast %300 : vector<4x1xf32> to vector<4x64xf32>
    %330 = arith.subf %328, %329 : vector<4x64xf32>
    %331 = vector.broadcast %307 : vector<4x1xf32> to vector<4x64xf32>
    %332 = arith.mulf %330, %331 : vector<4x64xf32>
    %c0_316 = arith.constant 0 : index
    %c4_317 = arith.constant 4 : index
    %c64_318 = arith.constant 64 : index
    %333 = vector.load %arg7[%c0_316, %c4_317, %c64_318] : memref<1x8x256xf32, #tpu.memory_space<vmem>>, vector<1x4x64xf32>
    %334 = vector.shape_cast %333 : vector<1x4x64xf32> to vector<4x64xf32>
    %335 = vector.shape_cast %332 : vector<4x64xf32> to vector<1x4x64xf32>
    tpu.vector_store %arg7[%c0_316, %c4_317, %c64_318], %335 {strides = array<i32>} : memref<1x8x256xf32, #tpu.memory_space<vmem>>, vector<1x4x64xf32>,
    %c0_319 = arith.constant 0 : index
    %c2_320 = arith.constant 2 : index
    %c0_321 = arith.constant 0 : index
    %c0_322 = arith.constant 0 : index
    %336 = vector.load %arg1[%c0_319, %c2_320, %c0_321, %c0_322] : memref<1x4x4x64xf32, #tpu.memory_space<vmem>>, vector<1x1x4x64xf32>
    %337 = vector.shape_cast %336 : vector<1x1x4x64xf32> to vector<4x64xf32>
    %c0_323 = arith.constant 0 : index
    %c0_324 = arith.constant 0 : index
    %c128_325 = arith.constant 128 : index
    %338 = vector.load %arg7[%c0_323, %c0_324, %c128_325] : memref<1x8x256xf32, #tpu.memory_space<vmem>>, vector<1x4x64xf32>
    %339 = vector.shape_cast %338 : vector<1x4x64xf32> to vector<4x64xf32>
    %340 = vector.shape_cast %337 : vector<4x64xf32> to vector<1x4x64xf32>
    tpu.vector_store %arg7[%c0_323, %c0_324, %c128_325], %340 {strides = array<i32>} : memref<1x8x256xf32, #tpu.memory_space<vmem>>, vector<1x4x64xf32>,
    %c2_326 = arith.constant 2 : index
    %c0_327 = arith.constant 0 : index
    %c0_328 = arith.constant 0 : index
    %341 = vector.load %arg12[%c2_326, %c0_327, %c0_328] : memref<4x4x64xf32, #tpu.memory_space<vmem>>, vector<1x4x64xf32>
    %342 = vector.shape_cast %341 : vector<1x4x64xf32> to vector<4x64xf32>
    %343 = vector.broadcast %300 : vector<4x1xf32> to vector<4x64xf32>
    %344 = arith.subf %342, %343 : vector<4x64xf32>
    %345 = vector.broadcast %307 : vector<4x1xf32> to vector<4x64xf32>
    %346 = arith.mulf %344, %345 : vector<4x64xf32>
    %c0_329 = arith.constant 0 : index
    %c4_330 = arith.constant 4 : index
    %c128_331 = arith.constant 128 : index
    %347 = vector.load %arg7[%c0_329, %c4_330, %c128_331] : memref<1x8x256xf32, #tpu.memory_space<vmem>>, vector<1x4x64xf32>
    %348 = vector.shape_cast %347 : vector<1x4x64xf32> to vector<4x64xf32>
    %349 = vector.shape_cast %346 : vector<4x64xf32> to vector<1x4x64xf32>
    tpu.vector_store %arg7[%c0_329, %c4_330, %c128_331], %349 {strides = array<i32>} : memref<1x8x256xf32, #tpu.memory_space<vmem>>, vector<1x4x64xf32>,
    %c0_332 = arith.constant 0 : index
    %c3_333 = arith.constant 3 : index
    %c0_334 = arith.constant 0 : index
    %c0_335 = arith.constant 0 : index
    %350 = vector.load %arg1[%c0_332, %c3_333, %c0_334, %c0_335] : memref<1x4x4x64xf32, #tpu.memory_space<vmem>>, vector<1x1x4x64xf32>
    %351 = vector.shape_cast %350 : vector<1x1x4x64xf32> to vector<4x64xf32>
    %c0_336 = arith.constant 0 : index
    %c0_337 = arith.constant 0 : index
    %c192 = arith.constant 192 : index
    %352 = vector.load %arg7[%c0_336, %c0_337, %c192] : memref<1x8x256xf32, #tpu.memory_space<vmem>>, vector<1x4x64xf32>
    %353 = vector.shape_cast %352 : vector<1x4x64xf32> to vector<4x64xf32>
    %354 = vector.shape_cast %351 : vector<4x64xf32> to vector<1x4x64xf32>
    tpu.vector_store %arg7[%c0_336, %c0_337, %c192], %354 {strides = array<i32>} : memref<1x8x256xf32, #tpu.memory_space<vmem>>, vector<1x4x64xf32>,
    %c3_338 = arith.constant 3 : index
    %c0_339 = arith.constant 0 : index
    %c0_340 = arith.constant 0 : index
    %355 = vector.load %arg12[%c3_338, %c0_339, %c0_340] : memref<4x4x64xf32, #tpu.memory_space<vmem>>, vector<1x4x64xf32>
    %356 = vector.shape_cast %355 : vector<1x4x64xf32> to vector<4x64xf32>
    %357 = vector.broadcast %300 : vector<4x1xf32> to vector<4x64xf32>
    %358 = arith.subf %356, %357 : vector<4x64xf32>
    %359 = vector.broadcast %307 : vector<4x1xf32> to vector<4x64xf32>
    %360 = arith.mulf %358, %359 : vector<4x64xf32>
    %c0_341 = arith.constant 0 : index
    %c4_342 = arith.constant 4 : index
    %c192_343 = arith.constant 192 : index
    %361 = vector.load %arg7[%c0_341, %c4_342, %c192_343] : memref<1x8x256xf32, #tpu.memory_space<vmem>>, vector<1x4x64xf32>
    %362 = vector.shape_cast %361 : vector<1x4x64xf32> to vector<4x64xf32>
    %363 = vector.shape_cast %360 : vector<4x64xf32> to vector<1x4x64xf32>
    tpu.vector_store %arg7[%c0_341, %c4_342, %c192_343], %363 {strides = array<i32>} : memref<1x8x256xf32, #tpu.memory_space<vmem>>, vector<1x4x64xf32>,
    return
  }
  func.func @transform_0(%arg0: i32) -> (i32, i32, i32, i32) {
    %c0_i32 = arith.constant 0 : i32
    %c0_i32_0 = arith.constant 0 : i32
    %c0_i32_1 = arith.constant 0 : i32
    %c0_i32_2 = arith.constant 0 : i32
    return %arg0, %c0_i32, %c0_i32_0, %c0_i32_1 : i32, i32, i32, i32
  }
  func.func @transform_1(%arg0: i32) -> (i32, i32, i32) {
    %c0_i32 = arith.constant 0 : i32
    %c0_i32_0 = arith.constant 0 : i32
    %c0_i32_1 = arith.constant 0 : i32
    %c0_i32_2 = arith.constant 0 : i32
    return %c0_i32, %c0_i32_0, %c0_i32_1 : i32, i32, i32
  }
  func.func @transform_2(%arg0: i32) -> (i32, i32) {
    %c0_i32 = arith.constant 0 : i32
    %c0_i32_0 = arith.constant 0 : i32
    %c0_i32_1 = arith.constant 0 : i32
    return %c0_i32, %c0_i32_0 : i32, i32
  }
  func.func @transform_3(%arg0: i32) -> (i32, i32) {
    %c0_i32 = arith.constant 0 : i32
    %c0_i32_0 = arith.constant 0 : i32
    %c0_i32_1 = arith.constant 0 : i32
    return %c0_i32, %c0_i32_0 : i32, i32
  }
  func.func @transform_4(%arg0: i32) -> (i32, i32, i32) {
    %c0_i32 = arith.constant 0 : i32
    %c0_i32_0 = arith.constant 0 : i32
    %c0_i32_1 = arith.constant 0 : i32
    %c0_i32_2 = arith.constant 0 : i32
    return %c0_i32, %c0_i32_0, %c0_i32_1 : i32, i32, i32
  }
  func.func @transform_5(%arg0: i32) -> (i32, i32) {
    %c0_i32 = arith.constant 0 : i32
    %c0_i32_0 = arith.constant 0 : i32
    %c0_i32_1 = arith.constant 0 : i32
    return %c0_i32, %c0_i32_0 : i32, i32
  }
  func.func @transform_6(%arg0: i32) -> (i32, i32, i32) {
    %c0_i32 = arith.constant 0 : i32
    %c0_i32_0 = arith.constant 0 : i32
    %c0_i32_1 = arith.constant 0 : i32
    return %arg0, %c0_i32, %c0_i32_0 : i32, i32, i32
  }
}

</mosaic_0001>

<bundles_post_ra>
// kernel: unet_innermost_forward.1
= control target key start
LH: loop header
LB: loop body
LE: loop exit
PB: predicated region body
PF: predicated region fallthrough
CT: control target
= control target key end

     0   :  { %s1645_s21 = smov 0   ;;  %s1962_s0 = inlined_call_operand.vmem [shape: f32[2,4,4,64], index: 0, kind: input, shape index: {}]   ;;  %s1963_s1 = inlined_call_operand.vmem [shape: f32[9,1,64], index: 1, kind: input, shape index: {}]   ;;  %s1964_s2 = inlined_call_operand.vmem [shape: f32[8,64], index: 2, kind: input, shape index: {}]   ;;  %s1965_s3 = inlined_call_operand.vmem [shape: f32[8,1], index: 3, kind: input, shape index: {}]   ;;  %s1966_s4 = inlined_call_operand.vmem [shape: f32[4,4,32], index: 4, kind: input, shape index: {}]   ;;  %s1967_s5 = inlined_call_operand.vmem [shape: f32[4,1], index: 5, kind: input, shape index: {}]   ;;  %s1968_s6 = inlined_call_operand.vmem [shape: f32[2,8,256], index: 6, kind: output, shape index: {}]  }
   0x1 LB: > { %s1363_s22 = sadd.s32 4294967295, %s1595_s21   ;;  %p1367_p0 = scmp.ge.s32.totalorder %s1595_s21, 1  ;;  %s1595_s21 = sphi %s1645_s21, %s16_s21  }
   0x2   : > { %p212_p1 = scmp.lt.s32.totalorder %s1595_s21, 3 }
   0x4   : > { %p213_p2 = pnand %p1367_p0, %p212_p1 }
   0x5   : > { %v1656_v0 = vld [vmem:[%s1963_s1 + $0x1] ss:$0 sm:$0xff] (!%p213_p2)  ;;  %v1661_v1 = vld [vmem:[%s1963_s1] ss:$0 sm:$0xff] (!%p213_p2)  ;;  %s1597_s27 = smov (!%p213_p2), 120   ;;  %s1598_s28 = smov (!%p213_p2), 119  }
   0x6   : > { %216 = sbr.rel (%p213_p2) target bundleno = 1180 (0x49c), region = 44  ;;  %347 = vrot.lane.b32.xlu1 (!%p213_p2), %v1656_v0, %s1597_s27  ;;  %298 = vrot.lane.b32.xlu0 (!%p213_p2), %v1661_v1, %s1598_s28  ;;  %v1670_v2 = vld [vmem:[%s1963_s1 + $0x2] ss:$0 sm:$0xff] (!%p213_p2)  ;;  %p242_p3 = scmp.lt.s32.totalorder (!%p213_p2), %s1363_s22, 1  ;;  %vm253_vm0 = vcmask (!%p213_p2), 519168   ;;  %vm263_vm1 = vcmask (!%p213_p2), 523264  }
   0x7   : > { %s1599_s7 = smov (!%p213_p2), 121   ;;  %v1600_v3 = vmov (!%p213_p2), 0.0   ;;  %v1684_v4 = vld [vmem:[%s1963_s1 + $0x3] ss:$0 sm:$0xff] (!%p213_p2)  ;;  %s1601_s11 = smov (!%p213_p2), 127   ;;  %vm301_vm6 = vcmask (!%p213_p2), 973824  }
   0x8   : > { %259 = vst [vmem:[#allocation2 + $0x24] sm:$0xff] (!%p213_p2), %v1600_v3  ;;  %252 = vst [vmem:[#allocation2] sm:$0xff] (!%p213_p2), %v1600_v3  ;;  %v1696_v5 = vld [vmem:[%s1963_s1 + $0x5] ss:$0 sm:$0xff] (!%p213_p2)  ;;  %s1602_s17 = smov (!%p213_p2), 1   ;;  %s1603_s24 = smov (!%p213_p2), 8  }
   0x9   : > { %255 = vst [vmem:[#allocation2 + $0xc] sm:$0xff] (!%p213_p2), %v1600_v3  ;;  %257 = vst [vmem:[#allocation2 + $0x18] sm:$0xff] (!%p213_p2), %v1600_v3  ;;  %v1716_v16 = vld [vmem:[%s1963_s1 + $0x7] ss:$0 sm:$0xff] (!%p213_p2)  ;;  %v1721_v17 = vld [vmem:[%s1963_s1 + $0x6] ss:$0 sm:$0xff] (!%p213_p2) }
   0xa   : > { %370 = vrot.lane.b32.xlu1 (!%p213_p2), %v1670_v2, %s1599_s7  ;;  %323 = vrot.lane.b32.xlu0 (!%p213_p2), %v1656_v0, %s1597_s27  ;;  %262 = vst [vmem:[#allocation3 + $0x8] sm:$0xff] (!%p213_p2), %v1600_v3  ;;  %s1604_s25 = smov (!%p213_p2), 7   ;;  %v1734_v20 = vld [vmem:[%s1963_s1 + $0x8] ss:$0 sm:$0xff] (!%p213_p2)  ;;  %s1605_s30 = smov (!%p213_p2), 9   ;;  %vm398_vm7 = vcmask (!%p213_p2), 1039360  }
   0xb   : > { %vm326_vm8 = vcmask (!%p213_p2), 982016   ;;  %vm373_vm9 = vcmask (!%p213_p2), 990208   ;;  %v1606_v60 = vmov (!%p213_p2), 0.0|0.0   ;;  %vm1607_vm10 = vmmov (!%p213_p2), 0   ;;  %s1609_s8 = smov (!%p213_p2), 64  }
   0xc   : > { %1528 = vmatprep.subr.bf16.mxu0 (!%p213_p2), %v1606_v60  ;;  %1540 = vmatprep.subr.bf16.mxu1 (!%p213_p2), %v1606_v60  ;;  %vm311_vm11 = vcmask (!%p213_p2), 72704   ;;  %vm336_vm12 = vcmask (!%p213_p2), 64512   ;;  %vm383_vm13 = vcmask (!%p213_p2), 56320   ;;  %vm408_vm14 = vcmask (!%p213_p2), 7168  }
   0xd   : > { %s1970_s22 = smov (!%p242_p3, %s1363_s22), 1  ;;  %1481 = vmatprep.mubr.msk.f32.mxu0 %vm1607_vm10, %v1600_v3  ;;  %1492 = vmatprep.mubr.msk.f32.mxu1 %vm1607_vm10, %v1600_v3  ;;  %vm711_vm15 = vcmask 261120  }
   0xe   : > { %s1434_s10 = sshll.u32 %s1970_s22, 4  ;;  %440 = vrot.lane.b32.xlu1 %v1684_v4, %s1601_s11  ;;  %395 = vrot.lane.b32.xlu0 %v1684_v4, %s1601_s11 }
   0xf   : > { %s1703_s16 = scalar_lea.vmem %s1962_s0, %s1434_s10  ;;  %s1943_s13 = scalar_lea.vmem %s1968_s6, %s1434_s10 }
  0x10   : > { %v1374_v6 = vld [vmem:[%s1703_s16 + $0xc] sm:$0xf]  ;;  %v1373_v7 = vld [vmem:[%s1703_s16 + $0x8] sm:$0xf]  ;;  %v1372_v8 = vld [vmem:[%s1703_s16 + $0x4] sm:$0xf] }
  0x11   : > { %vm286_vm2 = vcmp.ge.f32.partialorder %v1374_v6, 0.0  ;;  %v287_v9 = vmul.f32 0.2, %v1374_v6  ;;  %vm279_vm3 = vcmp.ge.f32.partialorder %v1373_v7, 0.0  ;;  %v280_v10 = vmul.f32 0.2, %v1373_v7 }
  0x12   : > { %vm272_vm4 = vcmp.ge.f32.partialorder %v1372_v8, 0.0  ;;  %v273_v11 = vmul.f32 0.2, %v1372_v8  ;;  %v265_v12 = vld [vmem:[%s1703_s16] sm:$0xf]  ;;  %424 = vrot.lane.b32.xlu0 %v1696_v5, %s1602_s17  ;;  %466 = vrot.lane.b32.xlu1 %v1696_v5, %s1602_s17 }
  0x13   : > { %v288_v13 = vsel %vm286_vm2, %v1374_v6, %v287_v9  ;;  %v281_v14 = vsel %vm279_vm3, %v1373_v7, %v280_v10  ;;  %vm266_vm5 = vcmp.ge.f32.partialorder %v265_v12, 0.0  ;;  %v267_v15 = vmul.f32 0.2, %v265_v12 }
  0x14   : > { %290 = vst.msk [vmem:[#allocation2 + $0x28] sm:$0xf] %vm253_vm0, %v288_v13  ;;  %283 = vst.msk [vmem:[#allocation2 + $0x1c] sm:$0xf] %vm253_vm0, %v281_v14  ;;  %v274_v18 = vsel %vm272_vm4, %v1372_v8, %v273_v11  ;;  %vm1282_vm2 = vcmask 1048068  }
  0x15   : > { %276 = vst.msk [vmem:[#allocation2 + $0x10] sm:$0xf] %vm253_vm0, %v274_v18  ;;  %v268_v19 = vsel %vm266_vm5, %v265_v12, %v267_v15 }
  0x16   : > { %269 = vst.msk [vmem:[#allocation2 + $0x4] sm:$0xf] %vm253_vm0, %v268_v19  ;;  %500 = vrot.lane.b32.xlu1 %v1716_v16, %s1603_s24  ;;  %483 = vrot.lane.b32.xlu0 %v1721_v17, %s1604_s25 }
  0x1a   : > { %533 = vrot.lane.b32.xlu1 %v1734_v20, %s1605_s30  ;;  %516 = vrot.lane.b32.xlu0 %v1716_v16, %s1603_s24 }
  0x1b   : > { %v340_v29 = vld [vmem:[#allocation2 + $0x24] sm:$0xff]  ;;  %v362_v39 = vld [vmem:[#allocation2 + $0x18] sm:$0xff] }
  0x1c   : > { %v414_v23 = vld [vmem:[#allocation2 + $0x10] sm:$0xf]  ;;  %v457_v55 = vld [vmem:[#allocation2 + $0x28] sm:$0xf]  ;;  %v455_v56 = vld [vmem:[#allocation2 + $0x1c] sm:$0xf] }
  0x1d   : > { %415 = vst.msk [vmem:[#allocation4 + $0x18] sm:$0xf] %vm253_vm0, %v414_v23  ;;  %v416_v33 = vld [vmem:[#allocation2 + $0x4] sm:$0xf]  ;;  %v387_v53 = vld [vmem:[#allocation2 + $0xc] sm:$0xff] }
  0x1e   : > { %v412_v50 = vld [vmem:[#allocation2 + $0x4] sm:$0xf]  ;;  %458 = vst.msk [vmem:[#allocation4 + $0x28] sm:$0xf] %vm253_vm0, %v457_v55  ;;  %456 = vst.msk [vmem:[#allocation4 + $0x24] sm:$0xf] %vm253_vm0, %v455_v56 }
  0x1f   : > { %413 = vst.msk [vmem:[#allocation4 + $0x14] sm:$0xf] %vm253_vm0, %v412_v50  ;;  %v459_v61 = vld [vmem:[#allocation2 + $0x1c] sm:$0xf]  ;;  %v492_v8 = vld [vmem:[#allocation2 + $0x4] sm:$0xf] }
  0x20   : > { %v475_v9 = vld [vmem:[#allocation2 + $0x10] sm:$0xf]  ;;  %v525_v14 = vld [vmem:[#allocation2 + $0x4] sm:$0xf] }
  0x21   : > { %v509_v18 = vld [vmem:[#allocation2 + $0x10] sm:$0xf]  ;;  %v551_v23 = vld [vmem:[%s1965_s3] sm:$0xff] }
  0x22   : > { %v542_v56 = vld [vmem:[%s1964_s2] sm:$0xff] }
  0x78   : > { %v348_v21 = vpop.permute.xlu1 %347  ;;  %v299_v22 = vpop.permute.xlu0 %298 }
  0x79   : > { %v300_v26 = vrot.slane %v299_v22, 4  ;;  %v349_v38 = vrot.slane %v348_v21, 4 }
  0x7b   : > { %v302_v30 = vsel %vm301_vm6, %v300_v26, %v299_v22  ;;  %v350_v44 = vsel %vm326_vm8, %v349_v38, %v348_v21  ;;  %v1608_v22 = vmov 0  }
  0x7c   : > { %v371_v24 = vpop.permute.xlu1 %370  ;;  %v324_v25 = vpop.permute.xlu0 %323  ;;  %v304_v35 = vmul.f32 %v340_v29, %v302_v30  ;;  %v352_v46 = vmul.f32 %v350_v44, %v340_v29  ;;  %1585 = vset.pattern.permute.xlu0 %v1608_v22  ;;  %1586 = vset.pattern.permute.xlu1 %v1608_v22 }
  0x7d   : > { %v325_v31 = vrot.slane %v324_v25, 4  ;;  %v372_v45 = vrot.slane %v371_v24, 4 }
  0x7e   : > { %v306_v43 = vcombine.high %v304_v35, %v304_v35  ;;  %v354_v52 = vcombine.high %v352_v46, %v352_v46 }
  0x7f   : > { %v327_v40 = vsel %vm326_vm8, %v325_v31, %v324_v25  ;;  %v374_v48 = vsel %vm373_vm9, %v372_v45, %v371_v24 }
  0x80   : > { %v441_v27 = vpop.permute.xlu1 %440  ;;  %v396_v28 = vpop.permute.xlu0 %395  ;;  %v329_v42 = vmul.f32 %v362_v39, %v327_v40  ;;  %v376_v51 = vmul.f32 %v374_v48, %v362_v39 }
  0x81   : > { %v442_v32 = vrot.slane %v441_v27, 4  ;;  %v397_v49 = vrot.slane %v396_v28, 4 }
  0x82   : > { %v331_v47 = vcombine.high %v329_v42, %v329_v42  ;;  %v378_v59 = vcombine.high %v376_v51, %v376_v51 }
  0x83   : > { %v443_v34 = vsel %vm398_vm7, %v442_v32, %v441_v27  ;;  %v399_v54 = vsel %vm398_vm7, %v397_v49, %v396_v28 }
  0x84   : > { %v445_v36 = vmul.f32 %v443_v34, %v340_v29  ;;  %v425_v37 = vpop.permute.xlu0 %424  ;;  %v467_v57 = vpop.permute.xlu1 %466  ;;  %v401_v58 = vmul.f32 %v399_v54, %v387_v53 }
  0x85   : > { %v427_v41 = vmul.f32 %v425_v37, %v416_v33  ;;  %v469_v6 = vmul.f32 %v467_v57, %v459_v61 }
  0x86   : > { %448 = vrot.lane.b32.xlu1 %v445_v36, %s1602_s17  ;;  %v403_v62 = vcombine.high %v401_v58, %v401_v58  ;;  %v447_v10 = vcombine.high %v445_v36, %v445_v36 }
  0x87   : > { %429 = vrot.lane.b32.xlu0 %v427_v41, %s1601_s11 }
  0x88   : > { %v501_v63 = vpop.permute.xlu1 %500  ;;  %v484_v7 = vpop.permute.xlu0 %483 }
  0x89   : > { %v503_v11 = vmul.f32 %v501_v63, %v492_v8  ;;  %v486_v12 = vmul.f32 %v484_v7, %v475_v9 }
  0x8a   : > { %309 = vrot.lane.b32.xlu1 %v306_v43, %s1605_s30 }
  0x8b   : > { %307 = vrot.lane.b32.xlu0 %v304_v35, %s1605_s30 }
  0x8c   : > { %v534_v13 = vpop.permute.xlu1 %533  ;;  %v517_v15 = vpop.permute.xlu0 %516 }
  0x8d   : > { %v536_v19 = vmul.f32 %v534_v13, %v525_v14  ;;  %v519_v21 = vmul.f32 %v517_v15, %v509_v18 }
  0x8e   : > { %334 = vrot.lane.b32.xlu1 %v331_v47, %s1603_s24 }
  0x8f   : > { %332 = vrot.lane.b32.xlu0 %v329_v42, %s1603_s24 }
  0x92   : > { %357 = vrot.lane.b32.xlu1 %v354_v52, %s1603_s24 }
  0x93   : > { %355 = vrot.lane.b32.xlu0 %v352_v46, %s1603_s24 }
  0x96   : > { %381 = vrot.lane.b32.xlu1 %v378_v59, %s1604_s25 }
  0x97   : > { %379 = vrot.lane.b32.xlu0 %v376_v51, %s1604_s25 }
  0x9a   : > { %406 = vrot.lane.b32.xlu1 %v403_v62, %s1602_s17 }
  0x9b   : > { %404 = vrot.lane.b32.xlu0 %v401_v58, %s1602_s17 }
  0x9e   : > { %471 = vrot.lane.b32.xlu1 %v469_v6, %s1601_s11 }
  0x9f   : > { %450 = vrot.lane.b32.xlu0 %v447_v10, %s1602_s17 }
  0xa2   : > { %505 = vrot.lane.b32.xlu1 %v503_v11, %s1597_s27 }
  0xa3   : > { %488 = vrot.lane.b32.xlu0 %v486_v12, %s1599_s7 }
  0xa6   : > { %538 = vrot.lane.b32.xlu1 %v536_v19, %s1598_s28 }
  0xa7   : > { %521 = vrot.lane.b32.xlu0 %v519_v21, %s1597_s27 }
  0xaa   : > { %642 = vrot.lane.b32.xlu1 %v1684_v4, %s1601_s11 }
  0xab   : > { %554 = vperm.xlu0 %1585, %v551_v23  }
  0xae   : > { %664 = vrot.lane.b32.xlu1 %v1656_v0, %s1597_s27 }
  0xaf   : > { %686 = vrot.lane.b32.xlu0 %v1661_v1, %s1598_s28 }
  0xb2   : > { %802 = vrot.lane.b32.xlu1 %v1696_v5, %s1602_s17 }
  0xb3   : > { %821 = vrot.lane.b32.xlu0 %v1670_v2, %s1599_s7 }
  0xb6   : > { %843 = vrot.lane.b32.xlu1 %v1656_v0, %s1597_s27 }
  0xb7   : > { %960 = vrot.lane.b32.xlu0 %v1716_v16, %s1603_s24 }
  0xba   : > { %976 = vrot.lane.b32.xlu1 %v1721_v17, %s1604_s25 }
  0xbb   : > { %995 = vrot.lane.b32.xlu0 %v1684_v4, %s1601_s11 }
  0xbe   : > { %1112 = vrot.lane.b32.xlu1 %v1734_v20, %s1605_s30 }
  0xbf   : > { %1128 = vrot.lane.b32.xlu0 %v1716_v16, %s1603_s24 }
  0xc2   : > { %1144 = vrot.lane.b32.xlu1 %v1696_v5, %s1602_s17 }
  0xf8   : > { %v449_v1 = vpop.permute.xlu1 %448 }
  0xf9   : > { %v430_v0 = vpop.permute.xlu0 %429 }
  0xfa   : > { %432 = vst.msk [vmem:[#allocation4 + $0x1c] sm:$0xf] %vm253_vm0, %v430_v0 }
  0xfc   : > { %v310_v2 = vpop.permute.xlu1 %309 }
  0xfd   : > { %v308_v24 = vpop.permute.xlu0 %307 }
  0xfe   : > { %v312_v17 = vsel %vm311_vm11, %v308_v24, %v310_v2 }
  0xff   : > { %314 = vst.msk [vmem:[#allocation4] sm:$0xf] %vm253_vm0, %v312_v17 }
 0x100   : > { %v335_v4 = vpop.permute.xlu1 %334 }
 0x101   : > { %v333_v20 = vpop.permute.xlu0 %332  ;;  %v546_v42 = vld [vmem:[#allocation4 + $0x18] sm:$0xff] }
 0x102   : > { %v337_v25 = vsel %vm336_vm12, %v333_v20, %v335_v4 }
 0x103   : > { %339 = vst.msk [vmem:[#allocation4 + $0x4] sm:$0xf] %vm253_vm0, %v337_v25 }
 0x104   : > { %v358_v16 = vpop.permute.xlu1 %357 }
 0x105   : > { %v356_v5 = vpop.permute.xlu0 %355 }
 0x106   : > { %v359_v26 = vsel %vm336_vm12, %v356_v5, %v358_v16  ;;  %v705_v16 = vld [vmem:[%s1967_s5] sm:$0xf] }
 0x107   : > { %361 = vst.msk [vmem:[#allocation4 + $0x8] sm:$0xf] %vm253_vm0, %v359_v26  ;;  %v1015_v5 = vld [vmem:[%s1967_s5] sm:$0xf] }
 0x108   : > { %v382_v27 = vpop.permute.xlu1 %381 }
 0x109   : > { %v380_v28 = vpop.permute.xlu0 %379 }
 0x10a   : > { %v384_v29 = vsel %vm383_vm13, %v380_v28, %v382_v27  ;;  %v543_v36 = vld [vmem:[#allocation4] sm:$0xff] }
 0x10b   : > { %386 = vst.msk [vmem:[#allocation4 + $0xc] sm:$0xf] %vm253_vm0, %v384_v29  ;;  %v863_v29 = vld [vmem:[%s1967_s5] sm:$0xf] }
 0x10c   : > { %v407_v30 = vpop.permute.xlu1 %406 }
 0x10d   : > { %v405_v31 = vpop.permute.xlu0 %404 }
 0x10e   : > { %v409_v32 = vsel %vm408_vm14, %v405_v31, %v407_v30  ;;  %v1161_v30 = vld [vmem:[%s1967_s5] sm:$0xf] }
 0x10f   : > { %411 = vst.msk [vmem:[#allocation4 + $0x10] sm:$0xf] %vm253_vm0, %v409_v32 }
 0x110   : > { %v472_v33 = vpop.permute.xlu1 %471 }
 0x111   : > { %474 = vst.msk [vmem:[#allocation4 + $0x2c] sm:$0xf] %vm253_vm0, %v472_v33  ;;  %v451_v34 = vpop.permute.xlu0 %450 }
 0x112   : > { %v452_v35 = vsel %vm408_vm14, %v449_v1, %v451_v34  ;;  %v544_v37 = vld [vmem:[#allocation4 + $0x8] sm:$0xff] }
 0x113   : > { %454 = vst.msk [vmem:[#allocation4 + $0x20] sm:$0xf] %vm253_vm0, %v452_v35  ;;  %v1529_v38 = vpack.c.bf16 %v544_v37, %v543_v36 }
 0x114   : > { %v506_v39 = vpop.permute.xlu1 %505 }
 0x115   : > { %508 = vst.msk [vmem:[#allocation4 + $0x34] sm:$0xf] %vm253_vm0, %v506_v39  ;;  %1530 = vmatpush3.bf16.msra.mxu0 %v1529_v38  ;;  %v489_v40 = vpop.permute.xlu0 %488 }
 0x116   : > { %491 = vst.msk [vmem:[#allocation4 + $0x30] sm:$0xf] %vm253_vm0, %v489_v40  ;;  %1531 = vmatprep.subr.bf16.mxu0 %v1606_v60  ;;  %v545_v41 = vld [vmem:[#allocation4 + $0x10] sm:$0xff] }
 0x117   : > { %v1532_v43 = vpack.c.bf16 %v546_v42, %v545_v41 }
 0x118   : > { %v539_v44 = vpop.permute.xlu1 %538  ;;  %v548_v45 = vld [vmem:[#allocation4 + $0x28] sm:$0xff] }
 0x119   : > { %541 = vst.msk [vmem:[#allocation4 + $0x3c] sm:$0xf] %vm253_vm0, %v539_v44  ;;  %v522_v46 = vpop.permute.xlu0 %521  ;;  %1533 = vmatpush3.bf16.msra.mxu0 %v1532_v43 }
 0x11a   : > { %524 = vst.msk [vmem:[#allocation4 + $0x38] sm:$0xf] %vm253_vm0, %v522_v46  ;;  %1534 = vmatprep.subr.bf16.mxu0 %v1606_v60  ;;  %v547_v47 = vld [vmem:[#allocation4 + $0x20] sm:$0xff] }
 0x11b   : > { %v1535_v48 = vpack.c.bf16 %v548_v45, %v547_v47 }
 0x11c   : > { %v643_v49 = vpop.permute.xlu1 %642 }
 0x11d   : > { %1536 = vmatpush3.bf16.msra.mxu0 %v1535_v48  ;;  %v645_v50 = vmul.f32 0.0, %v643_v49  ;;  %v549_v52 = vld [vmem:[#allocation4 + $0x30] sm:$0xff] }
 0x11e   : > { %1537 = vmatprep.subr.bf16.mxu0 %v1606_v60 }
 0x11f   : > { %649 = vrot.lane.b32.xlu0 %v645_v50, %s1602_s17 }
 0x120   : > { %v665_v51 = vpop.permute.xlu1 %664 }
 0x121   : > { %v550_v53 = vld [vmem:[#allocation4 + $0x38] sm:$0xff]  ;;  %v667_v54 = vmul.f32 0.0, %v665_v51 }
 0x122   : > { %v1538_v55 = vpack.c.bf16 %v550_v53, %v549_v52 }
 0x123   : > { %671 = vrot.lane.b32.xlu0 %v667_v54, %s1603_s24 }
 0x124   : > { %1539 = vmatpush3.bf16.msra.mxu0 %v1538_v55  ;;  %v803_v8 = vpop.permute.xlu1 %802 }
 0x125   : > { %1552 = vmatprep.subr.bf16.mxu0 %v1606_v60 }
 0x127   : > { %1482 = vmatmul.mubr.msk.f32.vlgmr.msra.gmra.mrb[0].mxu0 %vm263_vm1, %v542_v56 }
 0x128   : > { %1514 = vmatprep.mubr.msk.f32.mxu0 %vm1607_vm10, %v1600_v3  ;;  %v844_v14 = vpop.permute.xlu1 %843 }
 0x129   : > { %v846_v0 = vmul.f32 0.0, %v844_v14 }
 0x12a   : > { %v555_v57 = vpop.permute.xlu0 %554 }
 0x12c   : > { %v977_v22 = vpop.permute.xlu1 %976 }
 0x12e   : > { %v687_v58 = vpop.permute.xlu0 %686 }
 0x12f   : > { %v689_v59 = vmul.f32 0.0, %v687_v58 }
 0x130   : > { %v1113_v25 = vpop.permute.xlu1 %1112 }
 0x131   : > { %693 = vrot.lane.b32.xlu0 %v689_v59, %s1605_s30 }
 0x132   : > { %v822_v9 = vpop.permute.xlu0 %821 }
 0x133   : > { %v824_v21 = vmul.f32 0.0, %v822_v9 }
 0x134   : > { %v1145_v27 = vpop.permute.xlu1 %1144 }
 0x136   : > { %v961_v15 = vpop.permute.xlu0 %960 }
 0x13a   : > { %v996_v23 = vpop.permute.xlu0 %995 }
 0x13b   : > { %v998_v20 = vmul.f32 0.0, %v996_v23 }
 0x13e   : > { %v1129_v24 = vpop.permute.xlu0 %1128 }
 0x191   : > { %v650_v31 = vpop.permute.xlu0 %649 }
 0x195   : > { %v672_v32 = vpop.permute.xlu0 %671 }
 0x1a3   : > { %v694_v33 = vpop.permute.xlu0 %693 }
 0x1fa   : > { %v626_v61 = vpop.f32.mrb[0].mxu0 }
 0x1fb   : > { %v627_v62 = vadd.f32 %v626_v61, %v555_v57  ;;  %v1483_v63 = vpop.f32.mrb[1].mxu0 }
 0x1fd   : > { %v630_v6 = vmax.f32 %v627_v62, 0.0 }
 0x1ff   : > { %631 = vst.msk [vmem:[#allocation3 + $0x8] sm:$0xff] %vm263_vm1, %v630_v6 }
 0x206   : > { %v1829_v7 = vld [vmem:[#allocation3 + $0x8] sm:$0xff] }
 0x207   : > { %633 = vst.msk [vmem:[#allocation5] sm:$0xff] %vm263_vm1, %v1829_v7  ;;  %v805_v10 = vmul.f32 %v1829_v7, %v803_v8  ;;  %v646_v11 = vmul.f32 %v1829_v7, %v643_v49  ;;  %v825_v12 = vmul.f32 %v1829_v7, %v822_v9  ;;  %v668_v13 = vmul.f32 %v1829_v7, %v665_v51 }
 0x208   : > { %v847_v18 = vmul.f32 %v1829_v7, %v844_v14  ;;  %v690_v19 = vmul.f32 %v1829_v7, %v687_v58  ;;  %v979_v1 = vmul.f32 %v977_v22, %v1829_v7  ;;  %v999_v2 = vmul.f32 %v996_v23, %v1829_v7  ;;  %v700_v58 = vld [vmem:[%s1966_s4] sm:$0xf]  ;;  %v1419_v22 = vld [vmem:[%s1966_s4 + $0x8] sm:$0xf] }
 0x209   : > { %807 = vrot.lane.b32.xlu0 %v805_v10, %s1601_s11  ;;  %651 = vrot.lane.b32.xlu1 %v646_v11, %s1602_s17  ;;  %v963_v17 = vmul.f32 %v1829_v7, %v961_v15  ;;  %v1131_v4 = vmul.f32 %v1129_v24, %v1829_v7  ;;  %v1115_v26 = vmul.f32 %v1113_v25, %v1829_v7 }
 0x20a   : > { %v1147_v28 = vmul.f32 %v1145_v27, %v1829_v7 }
 0x20d   : > { %830 = vrot.lane.b32.xlu0 %v825_v12, %s1604_s25  ;;  %673 = vrot.lane.b32.xlu1 %v668_v13, %s1603_s24  ;;  %v1411_v13 = vld [vmem:[%s1966_s4 + $0x4] sm:$0xf] }
 0x20e   : > { %v701_v36 = vld [vmem:[#allocation5] sm:$0xff] }
 0x211   : > { %852 = vrot.lane.b32.xlu0 %v847_v18, %s1603_s24  ;;  %695 = vrot.lane.b32.xlu1 %v690_v19, %s1605_s30 }
 0x215   : > { %981 = vrot.lane.b32.xlu0 %v979_v1, %s1599_s7  ;;  %828 = vrot.lane.b32.xlu1 %v824_v21, %s1604_s25 }
 0x219   : > { %1004 = vrot.lane.b32.xlu0 %v999_v2, %s1602_s17  ;;  %850 = vrot.lane.b32.xlu1 %v846_v0, %s1603_s24 }
 0x21d   : > { %1133 = vrot.lane.b32.xlu0 %v1131_v4, %s1597_s27  ;;  %965 = vrot.lane.b32.xlu1 %v963_v17, %s1597_s27 }
 0x221   : > { %708 = vperm.xlu0 %1585, %v705_v16   ;;  %1002 = vrot.lane.b32.xlu1 %v998_v20, %s1602_s17 }
 0x225   : > { %1018 = vperm.xlu0 %1585, %v1015_v5   ;;  %1117 = vrot.lane.b32.xlu1 %v1115_v26, %s1598_s28 }
 0x229   : > { %1149 = vrot.lane.b32.xlu1 %v1147_v28, %s1601_s11 }
 0x22d   : > { %866 = vperm.xlu1 %1586, %v863_v29  }
 0x231   : > { %1164 = vperm.xlu1 %1586, %v1161_v30  }
 0x27b   : > { %v808_v34 = vpop.permute.xlu0 %807  ;;  %v652_v35 = vpop.permute.xlu1 %651 }
 0x27c   : > { %v653_v37 = vsel %vm408_vm14, %v650_v31, %v652_v35  ;;  %810 = vst.msk [vmem:[#allocation5] sm:$0xff] %vm263_vm1, %v808_v34 }
 0x27d   : > { %655 = vst.msk [vmem:[#allocation5 + $0x8] sm:$0xff] %vm263_vm1, %v653_v37 }
 0x27f   : > { %v831_v38 = vpop.permute.xlu0 %830  ;;  %v674_v39 = vpop.permute.xlu1 %673 }
 0x280   : > { %v675_v40 = vsel %vm336_vm12, %v672_v32, %v674_v39 }
 0x281   : > { %677 = vst.msk [vmem:[#allocation5 + $0x10] sm:$0xff] %vm263_vm1, %v675_v40 }
 0x283   : > { %v853_v41 = vpop.permute.xlu0 %852  ;;  %v696_v42 = vpop.permute.xlu1 %695  ;;  %v859_v57 = vld [vmem:[#allocation5] sm:$0xff] }
 0x284   : > { %v697_v43 = vsel %vm311_vm11, %v694_v33, %v696_v42  ;;  %v702_v44 = vld [vmem:[#allocation5 + $0x8] sm:$0xff] }
 0x285   : > { %699 = vst.msk [vmem:[#allocation5 + $0x18] sm:$0xff] %vm263_vm1, %v697_v43  ;;  %v1541_v45 = vpack.c.bf16 %v702_v44, %v701_v36  ;;  %812 = vst.msk [vmem:[#allocation5 + $0x8] sm:$0xff] %vm263_vm1, %v1829_v7 }
 0x287   : > { %v829_v46 = vpop.permute.xlu1 %828  ;;  %1542 = vmatpush3.bf16.msra.mxu1 %v1541_v45  ;;  %v982_v47 = vpop.permute.xlu0 %981 }
 0x288   : > { %v832_v48 = vsel %vm383_vm13, %v829_v46, %v831_v38  ;;  %1543 = vmatprep.subr.bf16.mxu1 %v1606_v60  ;;  %v703_v49 = vld [vmem:[#allocation5 + $0x10] sm:$0xff] }
 0x289   : > { %834 = vst.msk [vmem:[#allocation5 + $0x10] sm:$0xff] %vm263_vm1, %v832_v48  ;;  %v1431_v48 = vld [vmem:[%s1703_s16 + $0xc] sm:$0xf] }
 0x28b   : > { %v851_v50 = vpop.permute.xlu1 %850  ;;  %v1005_v55 = vpop.permute.xlu0 %1004 }
 0x28c   : > { %v854_v51 = vsel %vm336_vm12, %v851_v50, %v853_v41  ;;  %v860_v52 = vld [vmem:[#allocation5 + $0x8] sm:$0xff]  ;;  %v704_v53 = vld [vmem:[#allocation5 + $0x18] sm:$0xff]  ;;  %v1430_v50 = vld [vmem:[%s1703_s16 + $0x8] sm:$0xf] }
 0x28d   : > { %984 = vst.msk [vmem:[#allocation5 + $0x8] sm:$0xff] %vm263_vm1, %v982_v47  ;;  %v1544_v54 = vpack.c.bf16 %v704_v53, %v703_v49  ;;  %856 = vst.msk [vmem:[#allocation5 + $0x18] sm:$0xff] %vm263_vm1, %v854_v51  ;;  %v1547_v61 = vpack.c.bf16 %v860_v52, %v859_v57  ;;  %v1429_v47 = vld [vmem:[%s1703_s16 + $0x4] sm:$0xf]  ;;  %v1257_v49 = vld [vmem:[%s1703_s16] sm:$0xf] }
 0x28e   : > { %1258 = vst.msk [vmem:[%s1943_s13] sm:$0xf] %vm253_vm0, %v1257_v49  ;;  %1285 = vst.msk [vmem:[%s1943_s13 + $0x8] sm:$0xf] %vm253_vm0, %v1430_v50 }
 0x28f   : > { %v966_v56 = vpop.permute.xlu1 %965  ;;  %1545 = vmatpush3.bf16.msra.mxu1 %v1544_v54  ;;  %v1134_v63 = vpop.permute.xlu0 %1133 }
 0x290   : > { %968 = vst.msk [vmem:[#allocation5] sm:$0xff] %vm263_vm1, %v966_v56  ;;  %1546 = vmatprep.subr.bf16.mxu1 %v1606_v60  ;;  %v861_v59 = vld [vmem:[#allocation5 + $0x10] sm:$0xff] }
 0x291   : > { %986 = vst.msk [vmem:[#allocation5 + $0x10] sm:$0xff] %vm263_vm1, %v1829_v7 }
 0x292   : > { %1493 = vmatmul.mubr.msk.f32.vlgmr.msra.gmra.mrb[0].mxu1 %vm711_vm15, %v700_v58 }
 0x293   : > { %v1003_v62 = vpop.permute.xlu1 %1002  ;;  %1548 = vmatpush3.bf16.msra.mxu1 %v1547_v61  ;;  %1503 = vmatprep.mubr.msk.f32.mxu1 %vm1607_vm10, %v1600_v3 }
 0x294   : > { %v1012_v6 = vld [vmem:[#allocation5 + $0x8] sm:$0xff]  ;;  %v862_v8 = vld [vmem:[#allocation5 + $0x18] sm:$0xff]  ;;  %v1006_v9 = vsel %vm408_vm14, %v1003_v62, %v1005_v55  ;;  %1549 = vmatprep.subr.bf16.mxu1 %v1606_v60 }
 0x295   : > { %1136 = vst.msk [vmem:[#allocation5 + $0x8] sm:$0xff] %vm263_vm1, %v1134_v63  ;;  %1008 = vst.msk [vmem:[#allocation5 + $0x18] sm:$0xff] %vm263_vm1, %v1006_v9  ;;  %v1550_v10 = vpack.c.bf16 %v862_v8, %v861_v59 }
 0x297   : > { %v1118_v11 = vpop.permute.xlu1 %1117  ;;  %v1011_v12 = vld [vmem:[#allocation5] sm:$0xff]  ;;  %1551 = vmatpush3.bf16.msra.mxu1 %v1550_v10 }
 0x298   : > { %1120 = vst.msk [vmem:[#allocation5] sm:$0xff] %vm263_vm1, %v1118_v11  ;;  %v1553_v14 = vpack.c.bf16 %v1012_v6, %v1011_v12  ;;  %1558 = vmatprep.subr.bf16.mxu1 %v1606_v60  ;;  %v1013_v15 = vld [vmem:[#allocation5 + $0x10] sm:$0xff] }
 0x29a   : > { %1504 = vmatmul.mubr.msk.f32.vlgmr.msra.gmra.mrb[2].mxu1 %vm711_vm15, %v1411_v13  ;;  %1554 = vmatpush3.bf16.msra.mxu0 %v1553_v14 }
 0x29b   : > { %v1150_v18 = vpop.permute.xlu1 %1149  ;;  %1555 = vmatprep.subr.bf16.mxu0 %v1606_v60  ;;  %1525 = vmatprep.mubr.msk.f32.mxu1 %vm1607_vm10, %v1600_v3 }
 0x29c   : > { %1152 = vst.msk [vmem:[#allocation5 + $0x10] sm:$0xff] %vm263_vm1, %v1150_v18  ;;  %v1014_v19 = vld [vmem:[#allocation5 + $0x18] sm:$0xff]  ;;  %v1158_v1 = vld [vmem:[#allocation5 + $0x8] sm:$0xff] }
 0x29d   : > { %v1556_v21 = vpack.c.bf16 %v1014_v19, %v1013_v15  ;;  %1154 = vst.msk [vmem:[#allocation5 + $0x18] sm:$0xff] %vm263_vm1, %v1829_v7  ;;  %v1427_v7 = vld [vmem:[%s1966_s4 + $0xc] sm:$0xf]  ;;  %vm1272_vm1 = vcmask 1043968  }
 0x29f   : > { %1557 = vmatpush3.bf16.msra.mxu0 %v1556_v21  ;;  %v1157_v23 = vld [vmem:[#allocation5] sm:$0xff] }
 0x2a0   : > { %v1559_v0 = vpack.c.bf16 %v1158_v1, %v1157_v23  ;;  %v709_v17 = vpop.permute.xlu0 %708 }
 0x2a2   : > { %1515 = vmatmul.mubr.msk.f32.vlgmr.msra.gmra.mrb[2].mxu0 %vm711_vm15, %v1419_v22  ;;  %1560 = vmatpush3.bf16.msra.mxu1 %v1559_v0 }
 0x2a3   : > { %1561 = vmatprep.subr.bf16.mxu1 %v1606_v60  ;;  %v1159_v3 = vld [vmem:[#allocation5 + $0x10] sm:$0xff] }
 0x2a4   : > { %v1160_v2 = vld [vmem:[#allocation5 + $0x18] sm:$0xff]  ;;  %v1019_v33 = vpop.permute.xlu0 %1018 }
 0x2a5   : > { %v1562_v24 = vpack.c.bf16 %v1160_v2, %v1159_v3 }
 0x2a7   : > { %1563 = vmatpush3.bf16.msra.mxu1 %v1562_v24 }
 0x2aa   : > { %1526 = vmatmul.mubr.msk.f32.vlgmr.msra.gmra.mrb[4].mxu1 %vm711_vm15, %v1427_v7 }
 0x2ac   : > { %v867_v60 = vpop.permute.xlu1 %866 }
 0x2b0   : > { %v1165_v40 = vpop.permute.xlu1 %1164 }
 0x365   : > { %v781_v4 = vpop.f32.mrb[0].mxu1 }
 0x366   : > { %v782_v20 = vadd.f32 %v781_v4, %v709_v17  ;;  %v1494_v25 = vpop.f32.mrb[1].mxu1 }
 0x368   : > { %794 = vst.msk [vmem:[#allocation6] sm:$0xf] %vm253_vm0, %v782_v20  ;;  %v785_v16 = vsel %vm253_vm0, %v782_v20, 0.0  ;;  %v789_v5 = vmul.f32 %v782_v20, %v782_v20 }
 0x369   : > { %786 = vadd.xlane.f32.xlu0 %v785_v16 }
 0x36a   : > { %v790_v26 = vsel %vm253_vm0, %v789_v5, 0.0 }
 0x36d   : > { %791 = vadd.xlane.f32.xlu0 %v790_v26  ;;  %v938_v27 = vpop.f32.mrb[2].mxu1 }
 0x36e   : > { %v939_v28 = vadd.f32 %v938_v27, %v867_v60  ;;  %v1505_v29 = vpop.f32.mrb[3].mxu1 }
 0x36f   : > { %v1259_v18 = vld [vmem:[#allocation6] sm:$0xf] }
 0x370   : > { %952 = vst.msk [vmem:[#allocation6 + $0x4] sm:$0xf] %vm253_vm0, %v939_v28  ;;  %v942_v30 = vsel %vm253_vm0, %v939_v28, 0.0  ;;  %v946_v31 = vmul.f32 %v939_v28, %v939_v28 }
 0x371   : > { %943 = vadd.xlane.f32.xlu1 %v942_v30 }
 0x372   : > { %v947_v32 = vsel %vm253_vm0, %v946_v31, 0.0 }
 0x373   : > { %948 = vadd.xlane.f32.xlu0 %v947_v32 }
 0x375   : > { %v1090_v34 = vpop.f32.mrb[2].mxu0 }
 0x376   : > { %v1091_v35 = vadd.f32 %v1090_v34, %v1019_v33  ;;  %v1516_v36 = vpop.f32.mrb[3].mxu0 }
 0x377   : > { %v1274_v22 = vld [vmem:[#allocation6 + $0x4] sm:$0xf] }
 0x378   : > { %1104 = vst.msk [vmem:[#allocation6 + $0x8] sm:$0xf] %vm253_vm0, %v1091_v35  ;;  %v1094_v37 = vsel %vm253_vm0, %v1091_v35, 0.0  ;;  %v1098_v38 = vmul.f32 %v1091_v35, %v1091_v35 }
 0x379   : > { %1095 = vadd.xlane.f32.xlu1 %v1094_v37 }
 0x37a   : > { %v1099_v39 = vsel %vm253_vm0, %v1098_v38, 0.0 }
 0x37b   : > { %1100 = vadd.xlane.f32.xlu0 %v1099_v39 }
 0x37d   : > { %v1236_v41 = vpop.f32.mrb[4].mxu1 }
 0x37e   : > { %v1237_v42 = vadd.f32 %v1236_v41, %v1165_v40  ;;  %v1527_v43 = vpop.f32.mrb[5].mxu1 }
 0x37f   : > { %v1286_v19 = vld [vmem:[#allocation6 + $0x8] sm:$0xf] }
 0x380   : > { %1250 = vst.msk [vmem:[#allocation6 + $0xc] sm:$0xf] %vm253_vm0, %v1237_v42  ;;  %v1240_v44 = vsel %vm253_vm0, %v1237_v42, 0.0  ;;  %v1244_v45 = vmul.f32 %v1237_v42, %v1237_v42 }
 0x381   : > { %1241 = vadd.xlane.f32.xlu1 %v1240_v44 }
 0x382   : > { %v1245_v46 = vsel %vm253_vm0, %v1244_v45, 0.0  ;;  %vm1265_vm0 = vcmask 523268  }
 0x383   : > { %1246 = vadd.xlane.f32.xlu0 %v1245_v46 }
 0x387   : > { %v1299_v21 = vld [vmem:[#allocation6 + $0xc] sm:$0xf] }
 0x392   : > { %1269 = vrot.lane.b32.xlu1 %v1429_v47, %s1609_s8 }
 0x396   : > { %1295 = vrot.lane.b32.xlu1 %v1431_v48, %s1609_s8 }
 0x3f6   : > { %v787_v51 = vpop.xlane.xlu0 %786 }
 0x3fa   : > { %v792_v52 = vpop.xlane.xlu0 %791 }
 0x3fe   : > { %v944_v53 = vpop.xlane.xlu1 %943 }
 0x3ff   : > { %v945_v56 = vadd.f32 %v944_v53, %v787_v51 }
 0x400   : > { %v949_v54 = vpop.xlane.xlu0 %948 }
 0x401   : > { %v950_v58 = vadd.f32 %v949_v54, %v792_v52 }
 0x406   : > { %v1096_v55 = vpop.xlane.xlu1 %1095 }
 0x407   : > { %v1097_v59 = vadd.f32 %v1096_v55, %v945_v56 }
 0x408   : > { %v1101_v57 = vpop.xlane.xlu0 %1100 }
 0x409   : > { %v1102_v62 = vadd.f32 %v1101_v57, %v950_v58 }
 0x40e   : > { %v1242_v61 = vpop.xlane.xlu1 %1241 }
 0x40f   : > { %v1243_v63 = vadd.f32 %v1242_v61, %v1097_v59 }
 0x410   : > { %v1247_v6 = vpop.xlane.xlu0 %1246 }
 0x411   : > { %v1251_v8 = vmul.f32 0.00390625, %v1243_v63  ;;  %v1248_v9 = vadd.f32 %v1247_v6, %v1102_v62 }
 0x412   : > { %v1270_v10 = vpop.permute.xlu1 %1269 }
 0x413   : > { %v1252_v11 = vmul.f32 0.00390625, %v1248_v9  ;;  %v1253_v12 = vmul.f32 %v1251_v8, %v1251_v8  ;;  %1273 = vst.msk [vmem:[%s1943_s13] sm:$0xf] %vm1272_vm1, %v1270_v10  ;;  %v1260_v23 = vsub.f32 %v1259_v18, %v1251_v8  ;;  %v1287_v1 = vsub.f32 %v1286_v19, %v1251_v8 }
 0x414   : > { %v1300_v0 = vsub.f32 %v1299_v21, %v1251_v8  ;;  %v1275_v3 = vsub.f32 %v1274_v22, %v1251_v8 }
 0x415   : > { %v1254_v13 = vsub.f32 %v1252_v11, %v1253_v12 }
 0x416   : > { %v1296_v14 = vpop.permute.xlu1 %1295 }
 0x417   : > { %v1255_v15 = vadd.f32 1e-05, %v1254_v13  ;;  %1298 = vst.msk [vmem:[%s1943_s13 + $0x8] sm:$0xf] %vm1272_vm1, %v1296_v14 }
 0x419   : > { %1587 = vrsqrt.f32 %v1255_v15 }
 0x423   : > { %v1588_v2 = vpop.eup %1587 }
 0x424   : > { %v1301_v24 = vmul.f32 %v1588_v2, %v1300_v0  ;;  %v1276_v7 = vmul.f32 %v1588_v2, %v1275_v3  ;;  %v1261_v17 = vmul.f32 %v1588_v2, %v1260_v23  ;;  %v1288_v4 = vmul.f32 %v1588_v2, %v1287_v1 }
 0x426   : > { %v1303_v20 = vrot.slane %v1301_v24, 4  ;;  %v1278_v25 = vrot.slane %v1276_v7, 4  ;;  %v1263_v16 = vrot.slane %v1261_v17, 4  ;;  %v1290_v5 = vrot.slane %v1288_v4, 4 }
 0x428   : > { %1304 = vrot.lane.b32.xlu1 %v1303_v20, %s1609_s8  ;;  %1279 = vrot.lane.b32.xlu0 %v1278_v25, %s1609_s8  ;;  %1266 = vst.msk [vmem:[%s1943_s13] sm:$0xf0] %vm1265_vm0, %v1263_v16  ;;  %1292 = vst.msk [vmem:[%s1943_s13 + $0x8] sm:$0xf0] %vm1265_vm0, %v1290_v5 }
 0x49a   : > { %v1280_v60 = vpop.permute.xlu0 %1279  ;;  %v1305_v26 = vpop.permute.xlu1 %1304 }
 0x49b   : > { %1283 = vst.msk [vmem:[%s1943_s13] sm:$0xf0] %vm1282_vm2, %v1280_v60  ;;  %1307 = vst.msk [vmem:[%s1943_s13 + $0x8] sm:$0xf0] %vm1282_vm2, %v1305_v26 }
 0x49c PF: > { %s16_s21 = sadd.s32 1, %s1595_s21  }
 0x49d   : > { %p13_p4 = scmp.ge.s32.totalorder %s16_s21, 4  }
 0x49f   :  { %15 = sbr.rel (!%p13_p4) target bundleno = 1 (0x1), region = 93 }

</bundles_post_ra>
